<compile_context>
chip_gen: v5e
topology: v5e:2x2
jax: 0.10.0
libtpu: 0.0.40
codegen_flags: <defaults>
</compile_context>

<pallas_src>
import math
import functools

import jax
import jax.numpy as jnp
from jax import lax
from jax.experimental import pallas as pl
from jax.experimental.pallas import tpu as pltpu

_BF16 = jnp.bfloat16
_HIGHEST = lax.Precision.HIGHEST


def _layernorm(z, w, b, eps=1e-5):
    mu = jnp.mean(z, axis=-1, keepdims=True)
    var = jnp.mean((z - mu) * (z - mu), axis=-1, keepdims=True)
    return (z - mu) * lax.rsqrt(var + eps) * w + b


def block_kernel(x_ref,
                 ln1w_ref, ln1b_ref,
                 wq_ref, bq_ref,
                 wkv_ref, bkv_ref,
                 wpr_ref, bpr_ref,
                 ln2w_ref, ln2b_ref,
                 wfc_ref, bfc_ref,
                 wp2_ref, bp2_ref,
                 o_ref,
                 k_scr, v_scr,
                 *, n_head, head_dim, tq):
    C = n_head * head_dim
    t = pl.program_id(1)

    # ---- once per batch element: full-sequence K/V (bf16, head-major) ----
    @pl.when(t == 0)
    def _():
        x_full = x_ref[...]                                       # (T, C) f32
        h1 = _layernorm(x_full, ln1w_ref[...], ln1b_ref[...])
        kv = jnp.dot(h1.astype(_BF16), wkv_ref[...],
                     preferred_element_type=jnp.float32) + bkv_ref[...]
        kv = kv.astype(_BF16)                                     # (T, 2C)
        for h in range(n_head):
            k_scr[h, :, :] = kv[:, h * head_dim:(h + 1) * head_dim]
            v_scr[h, :, :] = kv[:, C + h * head_dim:C + (h + 1) * head_dim]

    # ---- per query tile ----
    row0 = pl.multiple_of(t * tq, tq)
    x_t = x_ref[pl.ds(row0, tq), :]                               # (tq, C) f32
    h1_t = _layernorm(x_t, ln1w_ref[...], ln1b_ref[...])
    q = jnp.dot(h1_t.astype(_BF16), wq_ref[...],
                preferred_element_type=jnp.float32) + bq_ref[...]
    # fold attention scale into q (cheaper than scaling the (tq, T) scores)
    q = q * jnp.float32(1.0 / math.sqrt(head_dim))
    q_bf = q.astype(_BF16)
    # TODO(synk): replace the per-head lane-slice stack with a head-major
    # reshape / pltpu.einshape once verified to lower on all target chips.
    q3 = jnp.stack(
        [q_bf[:, h * head_dim:(h + 1) * head_dim] for h in range(n_head)],
        axis=0)                                                   # (H, tq, hd)

    # batched multi-head attention, no causal mask (matches the reference)
    s = jnp.einsum('hqd,hkd->hqk', q3, k_scr[...],
                   preferred_element_type=jnp.float32)            # (H, tq, T)
    s = s - jnp.max(s, axis=-1, keepdims=True)
    p = jnp.exp(s)
    p = p * pl.reciprocal(jnp.sum(p, axis=-1, keepdims=True), approx=True)
    y3 = jnp.einsum('hqk,hkd->hqd', p.astype(_BF16), v_scr[...],
                    preferred_element_type=jnp.float32)           # (H, tq, hd)
    # TODO(synk): fuse head re-merge into the out-projection
    # (einsum 'hqd,hdc->qc') once multi-contracting-dim dots lower cleanly.
    y = jnp.concatenate([y3[h] for h in range(n_head)], axis=-1)  # (tq, C)
    y = jnp.dot(y.astype(_BF16), wpr_ref[...],
                preferred_element_type=jnp.float32) + bpr_ref[...]

    x1 = x_t + y            # dropout_1 is identity in eval mode

    # ---- ln_2 + MLP ----
    h2 = _layernorm(x1, ln2w_ref[...], ln2b_ref[...])
    hfc = jnp.dot(h2.astype(_BF16), wfc_ref[...],
                  preferred_element_type=jnp.float32) + bfc_ref[...]
    # exact GELU (erf form), matching nn.GELU() default
    hfc = 0.5 * hfc * (1.0 + lax.erf(hfc * jnp.float32(1.0 / math.sqrt(2.0))))
    mlp = jnp.dot(hfc.astype(_BF16), wp2_ref[...],
                  preferred_element_type=jnp.float32) + bp2_ref[...]

    o_ref[...] = x1 + mlp   # dropout_2 is identity in eval mode


def _vmem_capacity_bytes():
    try:
        return int(pltpu.get_tpu_info().vmem_capacity_bytes)
    except Exception:
        return 64 * 1024 * 1024      # conservative default (v7x per-core VMEM)


def _pick_tq(T, C, n_head, vmem_capacity):
    """Largest query tile whose materialized (H, tq, T) f32 score/prob tensors
    plus the (tq, 4C) MLP slab fit in ~1/8 of physical VMEM."""
    if T <= 8:
        return T
    budget = max(vmem_capacity // 8, 2 * 1024 * 1024)
    cands = [c for c in (1024, 512, 256, 128, 64, 32, 16, 8)
             if c <= T and T % c == 0]
    if not cands:
        return T
    for tq in cands:
        footprint = 2 * n_head * tq * T * 4 + tq * 4 * C * 4
        if footprint <= budget:
            return tq
    return cands[-1]


def transformer_block(x, params, n_head, *, tq=None):
    B, T, C = x.shape
    assert C % n_head == 0
    head_dim = C // n_head
    capacity = _vmem_capacity_bytes()
    if tq is None:
        tq = _pick_tq(T, C, n_head, capacity)
    assert T % tq == 0
    assert tq == T or tq % 8 == 0
    nt = T // tq

    # bf16 weight matrices (MXU operands); biases & LN params stay f32.
    w_q = params["w_qkv"][:, :C].astype(_BF16)
    w_kv = params["w_qkv"][:, C:].astype(_BF16)
    b_q = params["b_qkv"][:, :C]
    b_kv = params["b_qkv"][:, C:]

    param_list = [
        params["ln1_w"], params["ln1_b"],
        w_q, b_q, w_kv, b_kv,
        params["w_proj"].astype(_BF16), params["b_proj"],
        params["ln2_w"], params["ln2_b"],
        params["w_fc"].astype(_BF16), params["b_fc"],
        params["w_proj2"].astype(_BF16), params["b_proj2"],
    ]

    kernel = functools.partial(block_kernel, n_head=n_head,
                               head_dim=head_dim, tq=tq)

    # scoped-VMEM limit derived from the physical capacity of this generation
    vmem_limit = int(max(32 * 1024 * 1024,
                         min(capacity - 16 * 1024 * 1024, 100 * 1024 * 1024)))

    def build(single_buffer_params):
        def param_spec(p):
            nd = p.ndim
            kwargs = {}
            if single_buffer_params:
                # constant index map -> fetched once; one buffer is enough
                kwargs["pipeline_mode"] = pl.Buffered(1)
            return pl.BlockSpec(p.shape, lambda b, t, _nd=nd: (0,) * _nd,
                                **kwargs)

        in_specs = [pl.BlockSpec((pl.Squeezed(), T, C), lambda b, t: (b, 0, 0))]
        in_specs += [param_spec(p) for p in param_list]

        return pl.pallas_call(
            kernel,
            out_shape=jax.ShapeDtypeStruct((B, T, C), jnp.float32),
            grid_spec=pltpu.PrefetchScalarGridSpec(
                num_scalar_prefetch=0,
                grid=(B, nt),
                in_specs=in_specs,
                out_specs=pl.BlockSpec((pl.Squeezed(), tq, C),
                                       lambda b, t: (b, t, 0)),
                scratch_shapes=[
                    pltpu.VMEM((n_head, T, head_dim), _BF16),   # K (head-major)
                    pltpu.VMEM((n_head, T, head_dim), _BF16),   # V (head-major)
                ],
            ),
            compiler_params=pltpu.CompilerParams(
                dimension_semantics=("parallel", "arbitrary"),
                vmem_limit_bytes=vmem_limit,
            ),
        )

    try:
        return build(single_buffer_params=True)(x, *param_list)
    except Exception:
        # TODO(synk): pl.Buffered(1) single-buffered weight specs not supported
        # on this jax version; fall back to default double buffering.
        return build(single_buffer_params=False)(x, *param_list)


def reference_block(x, params, n_head):
    """Pure-JAX f32 reference for correctness checking."""
    B, T, C = x.shape
    hd = C // n_head
    mm = functools.partial(jnp.matmul, precision=_HIGHEST)

    def ln(z, w, b):
        mu = jnp.mean(z, axis=-1, keepdims=True)
        var = jnp.mean((z - mu) ** 2, axis=-1, keepdims=True)
        return (z - mu) / jnp.sqrt(var + 1e-5) * w + b

    h1 = ln(x, params["ln1_w"], params["ln1_b"])
    qkv = mm(h1, params["w_qkv"]) + params["b_qkv"]
    q, k, v = jnp.split(qkv, 3, axis=-1)
    q = q.reshape(B, T, n_head, hd).transpose(0, 2, 1, 3)
    k = k.reshape(B, T, n_head, hd).transpose(0, 2, 1, 3)
    v = v.reshape(B, T, n_head, hd).transpose(0, 2, 1, 3)
    s = jnp.einsum("bhqd,bhkd->bhqk", q, k, precision=_HIGHEST) / math.sqrt(hd)
    p = jax.nn.softmax(s, axis=-1)
    y = jnp.einsum("bhqk,bhkd->bhqd", p, v,
                   precision=_HIGHEST).transpose(0, 2, 1, 3).reshape(B, T, C)
    y = mm(y, params["w_proj"]) + params["b_proj"]
    x1 = x + y
    h2 = ln(x1, params["ln2_w"], params["ln2_b"])
    hfc = mm(h2, params["w_fc"]) + params["b_fc"]
    hfc = 0.5 * hfc * (1.0 + lax.erf(hfc / math.sqrt(2.0)))
    return x1 + (mm(hfc, params["w_proj2"]) + params["b_proj2"])


def make_params(key, n_embd):
    C = n_embd
    ks = jax.random.split(key, 6)
    std = 0.02
    return {
        "ln1_w":   jnp.ones((1, C), jnp.float32),
        "ln1_b":   jnp.zeros((1, C), jnp.float32),
        # nn.Linear weights stored (out, in); here pre-transposed to (in, out)
        "w_qkv":   (std * jax.random.normal(ks[0], (C, 3 * C))).astype(jnp.float32),
        "b_qkv":   (std * jax.random.normal(ks[1], (1, 3 * C))).astype(jnp.float32),
        "w_proj":  (std * jax.random.normal(ks[2], (C, C))).astype(jnp.float32),
        "b_proj":  jnp.zeros((1, C), jnp.float32),
        "ln2_w":   jnp.ones((1, C), jnp.float32),
        "ln2_b":   jnp.zeros((1, C), jnp.float32),
        "w_fc":    (std * jax.random.normal(ks[3], (C, 4 * C))).astype(jnp.float32),
        "b_fc":    (std * jax.random.normal(ks[4], (1, 4 * C))).astype(jnp.float32),
        "w_proj2": (std * jax.random.normal(ks[5], (4 * C, C))).astype(jnp.float32),
        "b_proj2": jnp.zeros((1, C), jnp.float32),
    }


if __name__ == "__main__":
    key = jax.random.PRNGKey(0)

    configs = [
        # (B, T, C, n_head, tq)
        (2, 8, 32, 4, None),     # small shape consistent with the module
        (2, 256, 128, 4, 128),   # exercises the multi-tile (grid-over-T) path
    ]
    for (B, T, C, n_head, tq) in configs:
        key, k_x, k_p = jax.random.split(key, 3)
        x = jax.random.normal(k_x, (B, T, C), dtype=jnp.float32)
        params = make_params(k_p, C)

        out = jax.block_until_ready(transformer_block(x, params, n_head, tq=tq))
        ref = reference_block(x, params, n_head)

        assert out.shape == (B, T, C)
        max_err = jnp.max(jnp.abs(out - ref))
        # bf16 MXU operands (f32 accumulation) -> loosened tolerance vs the
        # all-f32 reference.
        assert jnp.allclose(out, ref, atol=2e-2, rtol=2e-2), (
            f"config {(B, T, C, n_head, tq)}: max abs err = {max_err}")

    print("KERNEL_OK")
</pallas_src>

<mosaic_0001>
module attributes {stable_mosaic.version = 11 : i64} {
  func.func @block_kernel(%arg0: i32, %arg1: i32, %arg2: memref<1x8x32xf32, #tpu.memory_space<vmem>>, %arg3: memref<1x32xf32, #tpu.memory_space<vmem>>, %arg4: memref<1x32xf32, #tpu.memory_space<vmem>>, %arg5: memref<32x32xbf16, #tpu.memory_space<vmem>>, %arg6: memref<1x32xf32, #tpu.memory_space<vmem>>, %arg7: memref<32x64xbf16, #tpu.memory_space<vmem>>, %arg8: memref<1x64xf32, #tpu.memory_space<vmem>>, %arg9: memref<32x32xbf16, #tpu.memory_space<vmem>>, %arg10: memref<1x32xf32, #tpu.memory_space<vmem>>, %arg11: memref<1x32xf32, #tpu.memory_space<vmem>>, %arg12: memref<1x32xf32, #tpu.memory_space<vmem>>, %arg13: memref<32x128xbf16, #tpu.memory_space<vmem>>, %arg14: memref<1x128xf32, #tpu.memory_space<vmem>>, %arg15: memref<128x32xbf16, #tpu.memory_space<vmem>>, %arg16: memref<1x32xf32, #tpu.memory_space<vmem>>, %arg17: memref<1x8x32xf32, #tpu.memory_space<vmem>>, %arg18: memref<4x8x8xbf16, #tpu.memory_space<vmem>>, %arg19: memref<4x8x8xbf16, #tpu.memory_space<vmem>>) attributes {dimension_semantics = [#tpu.dimension_semantics<parallel>, #tpu.dimension_semantics<arbitrary>], iteration_bounds = array<i64: 2, 1>, scalar_prefetch = 0 : i64, scratch_operands = 2 : i64, tpu.core_type = #tpu.core_type<tc>, window_params = [{transform_indices = @transform_0, window_bounds = array<i64: 1, 8, 32>}, {pipeline_mode = #tpu.pipeline_mode<synchronous>, transform_indices = @transform_1, window_bounds = array<i64: 1, 32>}, {pipeline_mode = #tpu.pipeline_mode<synchronous>, transform_indices = @transform_2, window_bounds = array<i64: 1, 32>}, {pipeline_mode = #tpu.pipeline_mode<synchronous>, transform_indices = @transform_3, window_bounds = array<i64: 32, 32>}, {pipeline_mode = #tpu.pipeline_mode<synchronous>, transform_indices = @transform_4, window_bounds = array<i64: 1, 32>}, {pipeline_mode = #tpu.pipeline_mode<synchronous>, transform_indices = @transform_5, window_bounds = array<i64: 32, 64>}, {pipeline_mode = #tpu.pipeline_mode<synchronous>, transform_indices = @transform_6, window_bounds = array<i64: 1, 64>}, {pipeline_mode = #tpu.pipeline_mode<synchronous>, transform_indices = @transform_7, window_bounds = array<i64: 32, 32>}, {pipeline_mode = #tpu.pipeline_mode<synchronous>, transform_indices = @transform_8, window_bounds = array<i64: 1, 32>}, {pipeline_mode = #tpu.pipeline_mode<synchronous>, transform_indices = @transform_9, window_bounds = array<i64: 1, 32>}, {pipeline_mode = #tpu.pipeline_mode<synchronous>, transform_indices = @transform_10, window_bounds = array<i64: 1, 32>}, {pipeline_mode = #tpu.pipeline_mode<synchronous>, transform_indices = @transform_11, window_bounds = array<i64: 32, 128>}, {pipeline_mode = #tpu.pipeline_mode<synchronous>, transform_indices = @transform_12, window_bounds = array<i64: 1, 128>}, {pipeline_mode = #tpu.pipeline_mode<synchronous>, transform_indices = @transform_13, window_bounds = array<i64: 128, 32>}, {pipeline_mode = #tpu.pipeline_mode<synchronous>, transform_indices = @transform_14, window_bounds = array<i64: 1, 32>}, {transform_indices = @transform_15, window_bounds = array<i64: 1, 8, 32>}]} {
    %c0_i32 = arith.constant 0 : i32
    %0 = arith.cmpi eq, %arg1, %c0_i32 : i32
    %1 = arith.extui %0 : i1 to i32
    %c0_i32_0 = arith.constant 0 : i32
    %2 = arith.cmpi ne, %1, %c0_i32_0 : i32
    scf.if %2 {
      %c0_56 = arith.constant 0 : index
      %c0_57 = arith.constant 0 : index
      %c0_58 = arith.constant 0 : index
      %133 = vector.load %arg2[%c0_56, %c0_57, %c0_58] : memref<1x8x32xf32, #tpu.memory_space<vmem>>, vector<1x8x32xf32>
      %134 = vector.shape_cast %133 : vector<1x8x32xf32> to vector<8x32xf32>
      %c0_59 = arith.constant 0 : index
      %c0_60 = arith.constant 0 : index
      %135 = vector.load %arg3[%c0_59, %c0_60] : memref<1x32xf32, #tpu.memory_space<vmem>>, vector<1x32xf32>
      %c0_61 = arith.constant 0 : index
      %c0_62 = arith.constant 0 : index
      %136 = vector.load %arg4[%c0_61, %c0_62] : memref<1x32xf32, #tpu.memory_space<vmem>>, vector<1x32xf32>
      %cst_63 = arith.constant dense<0.000000e+00> : vector<8xf32>
      %137 = vector.multi_reduction <add>, %134, %cst_63 [1] : vector<8x32xf32> to vector<8xf32>
      %138 = vector.shape_cast %137 : vector<8xf32> to vector<8x1xf32>
      %cst_64 = arith.constant 3.200000e+01 : f32
      %139 = vector.broadcast %cst_64 : f32 to vector<8x1xf32>
      %140 = arith.divf %138, %139 : vector<8x1xf32>
      %141 = vector.broadcast %140 : vector<8x1xf32> to vector<8x32xf32>
      %142 = arith.subf %134, %141 : vector<8x32xf32>
      %143 = vector.broadcast %140 : vector<8x1xf32> to vector<8x32xf32>
      %144 = arith.subf %134, %143 : vector<8x32xf32>
      %145 = arith.mulf %142, %144 : vector<8x32xf32>
      %cst_65 = arith.constant dense<0.000000e+00> : vector<8xf32>
      %146 = vector.multi_reduction <add>, %145, %cst_65 [1] : vector<8x32xf32> to vector<8xf32>
      %147 = vector.shape_cast %146 : vector<8xf32> to vector<8x1xf32>
      %cst_66 = arith.constant 3.200000e+01 : f32
      %148 = vector.broadcast %cst_66 : f32 to vector<8x1xf32>
      %149 = arith.divf %147, %148 : vector<8x1xf32>
      %150 = vector.broadcast %140 : vector<8x1xf32> to vector<8x32xf32>
      %151 = arith.subf %134, %150 : vector<8x32xf32>
      %cst_67 = arith.constant 9.99999974E-6 : f32
      %152 = vector.broadcast %cst_67 : f32 to vector<8x1xf32>
      %153 = arith.addf %149, %152 : vector<8x1xf32>
      %154 = math.rsqrt %153 : vector<8x1xf32>
      %155 = vector.broadcast %154 : vector<8x1xf32> to vector<8x32xf32>
      %156 = arith.mulf %151, %155 : vector<8x32xf32>
      %157 = vector.broadcast %135 : vector<1x32xf32> to vector<8x32xf32>
      %158 = arith.mulf %156, %157 : vector<8x32xf32>
      %159 = vector.broadcast %136 : vector<1x32xf32> to vector<8x32xf32>
      %160 = arith.addf %158, %159 : vector<8x32xf32>
      %161 = arith.truncf %160 : vector<8x32xf32> to vector<8x32xbf16>
      %c0_68 = arith.constant 0 : index
      %c0_69 = arith.constant 0 : index
      %162 = vector.load %arg7[%c0_68, %c0_69] : memref<32x64xbf16, #tpu.memory_space<vmem>>, vector<32x64xbf16>
      %cst_70 = arith.constant dense<0.000000e+00> : vector<8x64xf32>
      %163 = tpu.matmul %161, %162, %cst_70 {dimension_numbers = #tpu.dot_dimension_numbers<[1], [0], [0], [1], [0, 0, 1, 1], [], []>} : vector<8x32xbf16>, vector<32x64xbf16>, vector<8x64xf32> -> vector<8x64xf32>
      %c0_71 = arith.constant 0 : index
      %c0_72 = arith.constant 0 : index
      %164 = vector.load %arg8[%c0_71, %c0_72] : memref<1x64xf32, #tpu.memory_space<vmem>>, vector<1x64xf32>
      %165 = vector.broadcast %164 : vector<1x64xf32> to vector<8x64xf32>
      %166 = arith.addf %163, %165 : vector<8x64xf32>
      %167 = arith.truncf %166 : vector<8x64xf32> to vector<8x64xbf16>
      %168 = vector.extract_strided_slice %167 {offsets = [0, 0], sizes = [8, 8], strides = [1, 1]} : vector<8x64xbf16> to vector<8x8xbf16>
      %c0_73 = arith.constant 0 : index
      %c0_74 = arith.constant 0 : index
      %c0_75 = arith.constant 0 : index
      %169 = vector.load %arg18[%c0_73, %c0_74, %c0_75] : memref<4x8x8xbf16, #tpu.memory_space<vmem>>, vector<1x8x8xbf16>
      %170 = vector.shape_cast %169 : vector<1x8x8xbf16> to vector<8x8xbf16>
      %171 = vector.shape_cast %168 : vector<8x8xbf16> to vector<1x8x8xbf16>
      tpu.vector_store %arg18[%c0_73, %c0_74, %c0_75], %171 {strides = array<i32>} : memref<4x8x8xbf16, #tpu.memory_space<vmem>>, vector<1x8x8xbf16>,
      %172 = vector.extract_strided_slice %167 {offsets = [0, 32], sizes = [8, 8], strides = [1, 1]} : vector<8x64xbf16> to vector<8x8xbf16>
      %c0_76 = arith.constant 0 : index
      %c0_77 = arith.constant 0 : index
      %c0_78 = arith.constant 0 : index
      %173 = vector.load %arg19[%c0_76, %c0_77, %c0_78] : memref<4x8x8xbf16, #tpu.memory_space<vmem>>, vector<1x8x8xbf16>
      %174 = vector.shape_cast %173 : vector<1x8x8xbf16> to vector<8x8xbf16>
      %175 = vector.shape_cast %172 : vector<8x8xbf16> to vector<1x8x8xbf16>
      tpu.vector_store %arg19[%c0_76, %c0_77, %c0_78], %175 {strides = array<i32>} : memref<4x8x8xbf16, #tpu.memory_space<vmem>>, vector<1x8x8xbf16>,
      %176 = vector.extract_strided_slice %167 {offsets = [0, 8], sizes = [8, 8], strides = [1, 1]} : vector<8x64xbf16> to vector<8x8xbf16>
      %c1 = arith.constant 1 : index
      %c0_79 = arith.constant 0 : index
      %c0_80 = arith.constant 0 : index
      %177 = vector.load %arg18[%c1, %c0_79, %c0_80] : memref<4x8x8xbf16, #tpu.memory_space<vmem>>, vector<1x8x8xbf16>
      %178 = vector.shape_cast %177 : vector<1x8x8xbf16> to vector<8x8xbf16>
      %179 = vector.shape_cast %176 : vector<8x8xbf16> to vector<1x8x8xbf16>
      tpu.vector_store %arg18[%c1, %c0_79, %c0_80], %179 {strides = array<i32>} : memref<4x8x8xbf16, #tpu.memory_space<vmem>>, vector<1x8x8xbf16>,
      %180 = vector.extract_strided_slice %167 {offsets = [0, 40], sizes = [8, 8], strides = [1, 1]} : vector<8x64xbf16> to vector<8x8xbf16>
      %c1_81 = arith.constant 1 : index
      %c0_82 = arith.constant 0 : index
      %c0_83 = arith.constant 0 : index
      %181 = vector.load %arg19[%c1_81, %c0_82, %c0_83] : memref<4x8x8xbf16, #tpu.memory_space<vmem>>, vector<1x8x8xbf16>
      %182 = vector.shape_cast %181 : vector<1x8x8xbf16> to vector<8x8xbf16>
      %183 = vector.shape_cast %180 : vector<8x8xbf16> to vector<1x8x8xbf16>
      tpu.vector_store %arg19[%c1_81, %c0_82, %c0_83], %183 {strides = array<i32>} : memref<4x8x8xbf16, #tpu.memory_space<vmem>>, vector<1x8x8xbf16>,
      %184 = vector.extract_strided_slice %167 {offsets = [0, 16], sizes = [8, 8], strides = [1, 1]} : vector<8x64xbf16> to vector<8x8xbf16>
      %c2 = arith.constant 2 : index
      %c0_84 = arith.constant 0 : index
      %c0_85 = arith.constant 0 : index
      %185 = vector.load %arg18[%c2, %c0_84, %c0_85] : memref<4x8x8xbf16, #tpu.memory_space<vmem>>, vector<1x8x8xbf16>
      %186 = vector.shape_cast %185 : vector<1x8x8xbf16> to vector<8x8xbf16>
      %187 = vector.shape_cast %184 : vector<8x8xbf16> to vector<1x8x8xbf16>
      tpu.vector_store %arg18[%c2, %c0_84, %c0_85], %187 {strides = array<i32>} : memref<4x8x8xbf16, #tpu.memory_space<vmem>>, vector<1x8x8xbf16>,
      %188 = vector.extract_strided_slice %167 {offsets = [0, 48], sizes = [8, 8], strides = [1, 1]} : vector<8x64xbf16> to vector<8x8xbf16>
      %c2_86 = arith.constant 2 : index
      %c0_87 = arith.constant 0 : index
      %c0_88 = arith.constant 0 : index
      %189 = vector.load %arg19[%c2_86, %c0_87, %c0_88] : memref<4x8x8xbf16, #tpu.memory_space<vmem>>, vector<1x8x8xbf16>
      %190 = vector.shape_cast %189 : vector<1x8x8xbf16> to vector<8x8xbf16>
      %191 = vector.shape_cast %188 : vector<8x8xbf16> to vector<1x8x8xbf16>
      tpu.vector_store %arg19[%c2_86, %c0_87, %c0_88], %191 {strides = array<i32>} : memref<4x8x8xbf16, #tpu.memory_space<vmem>>, vector<1x8x8xbf16>,
      %192 = vector.extract_strided_slice %167 {offsets = [0, 24], sizes = [8, 8], strides = [1, 1]} : vector<8x64xbf16> to vector<8x8xbf16>
      %c3 = arith.constant 3 : index
      %c0_89 = arith.constant 0 : index
      %c0_90 = arith.constant 0 : index
      %193 = vector.load %arg18[%c3, %c0_89, %c0_90] : memref<4x8x8xbf16, #tpu.memory_space<vmem>>, vector<1x8x8xbf16>
      %194 = vector.shape_cast %193 : vector<1x8x8xbf16> to vector<8x8xbf16>
      %195 = vector.shape_cast %192 : vector<8x8xbf16> to vector<1x8x8xbf16>
      tpu.vector_store %arg18[%c3, %c0_89, %c0_90], %195 {strides = array<i32>} : memref<4x8x8xbf16, #tpu.memory_space<vmem>>, vector<1x8x8xbf16>,
      %196 = vector.extract_strided_slice %167 {offsets = [0, 56], sizes = [8, 8], strides = [1, 1]} : vector<8x64xbf16> to vector<8x8xbf16>
      %c3_91 = arith.constant 3 : index
      %c0_92 = arith.constant 0 : index
      %c0_93 = arith.constant 0 : index
      %197 = vector.load %arg19[%c3_91, %c0_92, %c0_93] : memref<4x8x8xbf16, #tpu.memory_space<vmem>>, vector<1x8x8xbf16>
      %198 = vector.shape_cast %197 : vector<1x8x8xbf16> to vector<8x8xbf16>
      %199 = vector.shape_cast %196 : vector<8x8xbf16> to vector<1x8x8xbf16>
      tpu.vector_store %arg19[%c3_91, %c0_92, %c0_93], %199 {strides = array<i32>} : memref<4x8x8xbf16, #tpu.memory_space<vmem>>, vector<1x8x8xbf16>,
    } else {
    }
    %c8_i32 = arith.constant 8 : i32
    %3 = arith.muli %arg1, %c8_i32 : i32
    %4 = tpu.assume_multiple %3, 8 : i32
    %c0 = arith.constant 0 : index
    %5 = arith.index_cast %4 : i32 to index
    %c0_1 = arith.constant 0 : index
    %6 = vector.load %arg2[%c0, %5, %c0_1] : memref<1x8x32xf32, #tpu.memory_space<vmem>>, vector<1x8x32xf32>
    %7 = vector.shape_cast %6 : vector<1x8x32xf32> to vector<8x32xf32>
    %c0_2 = arith.constant 0 : index
    %c0_3 = arith.constant 0 : index
    %8 = vector.load %arg3[%c0_2, %c0_3] : memref<1x32xf32, #tpu.memory_space<vmem>>, vector<1x32xf32>
    %c0_4 = arith.constant 0 : index
    %c0_5 = arith.constant 0 : index
    %9 = vector.load %arg4[%c0_4, %c0_5] : memref<1x32xf32, #tpu.memory_space<vmem>>, vector<1x32xf32>
    %cst = arith.constant dense<0.000000e+00> : vector<8xf32>
    %10 = vector.multi_reduction <add>, %7, %cst [1] : vector<8x32xf32> to vector<8xf32>
    %11 = vector.shape_cast %10 : vector<8xf32> to vector<8x1xf32>
    %cst_6 = arith.constant 3.200000e+01 : f32
    %12 = vector.broadcast %cst_6 : f32 to vector<8x1xf32>
    %13 = arith.divf %11, %12 : vector<8x1xf32>
    %14 = vector.broadcast %13 : vector<8x1xf32> to vector<8x32xf32>
    %15 = arith.subf %7, %14 : vector<8x32xf32>
    %16 = vector.broadcast %13 : vector<8x1xf32> to vector<8x32xf32>
    %17 = arith.subf %7, %16 : vector<8x32xf32>
    %18 = arith.mulf %15, %17 : vector<8x32xf32>
    %cst_7 = arith.constant dense<0.000000e+00> : vector<8xf32>
    %19 = vector.multi_reduction <add>, %18, %cst_7 [1] : vector<8x32xf32> to vector<8xf32>
    %20 = vector.shape_cast %19 : vector<8xf32> to vector<8x1xf32>
    %cst_8 = arith.constant 3.200000e+01 : f32
    %21 = vector.broadcast %cst_8 : f32 to vector<8x1xf32>
    %22 = arith.divf %20, %21 : vector<8x1xf32>
    %23 = vector.broadcast %13 : vector<8x1xf32> to vector<8x32xf32>
    %24 = arith.subf %7, %23 : vector<8x32xf32>
    %cst_9 = arith.constant 9.99999974E-6 : f32
    %25 = vector.broadcast %cst_9 : f32 to vector<8x1xf32>
    %26 = arith.addf %22, %25 : vector<8x1xf32>
    %27 = math.rsqrt %26 : vector<8x1xf32>
    %28 = vector.broadcast %27 : vector<8x1xf32> to vector<8x32xf32>
    %29 = arith.mulf %24, %28 : vector<8x32xf32>
    %30 = vector.broadcast %8 : vector<1x32xf32> to vector<8x32xf32>
    %31 = arith.mulf %29, %30 : vector<8x32xf32>
    %32 = vector.broadcast %9 : vector<1x32xf32> to vector<8x32xf32>
    %33 = arith.addf %31, %32 : vector<8x32xf32>
    %34 = arith.truncf %33 : vector<8x32xf32> to vector<8x32xbf16>
    %c0_10 = arith.constant 0 : index
    %c0_11 = arith.constant 0 : index
    %35 = vector.load %arg5[%c0_10, %c0_11] : memref<32x32xbf16, #tpu.memory_space<vmem>>, vector<32x32xbf16>
    %cst_12 = arith.constant dense<0.000000e+00> : vector<8x32xf32>
    %36 = tpu.matmul %34, %35, %cst_12 {dimension_numbers = #tpu.dot_dimension_numbers<[1], [0], [0], [1], [0, 0, 1, 1], [], []>} : vector<8x32xbf16>, vector<32x32xbf16>, vector<8x32xf32> -> vector<8x32xf32>
    %c0_13 = arith.constant 0 : index
    %c0_14 = arith.constant 0 : index
    %37 = vector.load %arg6[%c0_13, %c0_14] : memref<1x32xf32, #tpu.memory_space<vmem>>, vector<1x32xf32>
    %38 = vector.broadcast %37 : vector<1x32xf32> to vector<8x32xf32>
    %39 = arith.addf %36, %38 : vector<8x32xf32>
    %cst_15 = arith.constant 0.353553385 : f32
    %40 = vector.broadcast %cst_15 : f32 to vector<8x32xf32>
    %41 = arith.mulf %39, %40 : vector<8x32xf32>
    %42 = arith.truncf %41 : vector<8x32xf32> to vector<8x32xbf16>
    %43 = vector.extract_strided_slice %42 {offsets = [0, 0], sizes = [8, 8], strides = [1, 1]} : vector<8x32xbf16> to vector<8x8xbf16>
    %44 = vector.extract_strided_slice %42 {offsets = [0, 8], sizes = [8, 8], strides = [1, 1]} : vector<8x32xbf16> to vector<8x8xbf16>
    %45 = vector.extract_strided_slice %42 {offsets = [0, 16], sizes = [8, 8], strides = [1, 1]} : vector<8x32xbf16> to vector<8x8xbf16>
    %46 = vector.extract_strided_slice %42 {offsets = [0, 24], sizes = [8, 8], strides = [1, 1]} : vector<8x32xbf16> to vector<8x8xbf16>
    %47 = vector.shape_cast %43 : vector<8x8xbf16> to vector<1x8x8xbf16>
    %48 = vector.shape_cast %44 : vector<8x8xbf16> to vector<1x8x8xbf16>
    %49 = vector.shape_cast %45 : vector<8x8xbf16> to vector<1x8x8xbf16>
    %50 = vector.shape_cast %46 : vector<8x8xbf16> to vector<1x8x8xbf16>
    %51 = tpu.concatenate %47, %48, %49, %50 in 0 : vector<1x8x8xbf16>, vector<1x8x8xbf16>, vector<1x8x8xbf16>, vector<1x8x8xbf16> -> vector<4x8x8xbf16>
    %c0_16 = arith.constant 0 : index
    %c0_17 = arith.constant 0 : index
    %c0_18 = arith.constant 0 : index
    %52 = vector.load %arg18[%c0_16, %c0_17, %c0_18] : memref<4x8x8xbf16, #tpu.memory_space<vmem>>, vector<4x8x8xbf16>
    "tpu.trace_start"() <{level = 10 : i32, message = "hqd,hkd->hqk"}> : () -> ()
    %cst_19 = arith.constant dense<0.000000e+00> : vector<4x8x8xf32>
    %53 = tpu.matmul %51, %52, %cst_19 {dimension_numbers = #tpu.dot_dimension_numbers<[2], [2], [1], [1], [0, 0, 0, 1, 1, 1], [0], [0]>} : vector<4x8x8xbf16>, vector<4x8x8xbf16>, vector<4x8x8xf32> -> vector<4x8x8xf32>
    "tpu.trace_stop"() : () -> ()
    %cst_20 = arith.constant dense<0xFF800000> : vector<4x8xf32>
    %54 = vector.multi_reduction <maximumf>, %53, %cst_20 [2] : vector<4x8x8xf32> to vector<4x8xf32>
    %55 = vector.shape_cast %54 : vector<4x8xf32> to vector<4x8x1xf32>
    %56 = vector.broadcast %55 : vector<4x8x1xf32> to vector<4x8x8xf32>
    %57 = arith.subf %53, %56 : vector<4x8x8xf32>
    %58 = math.exp %57 : vector<4x8x8xf32>
    %cst_21 = arith.constant dense<0.000000e+00> : vector<4x8xf32>
    %59 = vector.multi_reduction <add>, %58, %cst_21 [2] : vector<4x8x8xf32> to vector<4x8xf32>
    %60 = vector.shape_cast %59 : vector<4x8xf32> to vector<4x8x1xf32>
    %61 = tpu.reciprocal %60 {approx = true} : vector<4x8x1xf32> -> vector<4x8x1xf32>
    %62 = vector.broadcast %61 : vector<4x8x1xf32> to vector<4x8x8xf32>
    %63 = arith.mulf %58, %62 : vector<4x8x8xf32>
    %64 = arith.truncf %63 : vector<4x8x8xf32> to vector<4x8x8xbf16>
    %c0_22 = arith.constant 0 : index
    %c0_23 = arith.constant 0 : index
    %c0_24 = arith.constant 0 : index
    %65 = vector.load %arg19[%c0_22, %c0_23, %c0_24] : memref<4x8x8xbf16, #tpu.memory_space<vmem>>, vector<4x8x8xbf16>
    "tpu.trace_start"() <{level = 10 : i32, message = "hqk,hkd->hqd"}> : () -> ()
    %cst_25 = arith.constant dense<0.000000e+00> : vector<4x8x8xf32>
    %66 = tpu.matmul %64, %65, %cst_25 {dimension_numbers = #tpu.dot_dimension_numbers<[2], [1], [1], [2], [0, 0, 0, 1, 1, 2], [0], [0]>} : vector<4x8x8xbf16>, vector<4x8x8xbf16>, vector<4x8x8xf32> -> vector<4x8x8xf32>
    "tpu.trace_stop"() : () -> ()
    %67 = vector.extract_strided_slice %66 {offsets = [0, 0, 0], sizes = [1, 8, 8], strides = [1, 1, 1]} : vector<4x8x8xf32> to vector<1x8x8xf32>
    %68 = vector.shape_cast %67 : vector<1x8x8xf32> to vector<8x8xf32>
    %69 = vector.extract_strided_slice %66 {offsets = [1, 0, 0], sizes = [1, 8, 8], strides = [1, 1, 1]} : vector<4x8x8xf32> to vector<1x8x8xf32>
    %70 = vector.shape_cast %69 : vector<1x8x8xf32> to vector<8x8xf32>
    %71 = vector.extract_strided_slice %66 {offsets = [2, 0, 0], sizes = [1, 8, 8], strides = [1, 1, 1]} : vector<4x8x8xf32> to vector<1x8x8xf32>
    %72 = vector.shape_cast %71 : vector<1x8x8xf32> to vector<8x8xf32>
    %73 = vector.extract_strided_slice %66 {offsets = [3, 0, 0], sizes = [1, 8, 8], strides = [1, 1, 1]} : vector<4x8x8xf32> to vector<1x8x8xf32>
    %74 = vector.shape_cast %73 : vector<1x8x8xf32> to vector<8x8xf32>
    %75 = tpu.concatenate %68, %70, %72, %74 in 1 : vector<8x8xf32>, vector<8x8xf32>, vector<8x8xf32>, vector<8x8xf32> -> vector<8x32xf32>
    %76 = arith.truncf %75 : vector<8x32xf32> to vector<8x32xbf16>
    %c0_26 = arith.constant 0 : index
    %c0_27 = arith.constant 0 : index
    %77 = vector.load %arg9[%c0_26, %c0_27] : memref<32x32xbf16, #tpu.memory_space<vmem>>, vector<32x32xbf16>
    %cst_28 = arith.constant dense<0.000000e+00> : vector<8x32xf32>
    %78 = tpu.matmul %76, %77, %cst_28 {dimension_numbers = #tpu.dot_dimension_numbers<[1], [0], [0], [1], [0, 0, 1, 1], [], []>} : vector<8x32xbf16>, vector<32x32xbf16>, vector<8x32xf32> -> vector<8x32xf32>
    %c0_29 = arith.constant 0 : index
    %c0_30 = arith.constant 0 : index
    %79 = vector.load %arg10[%c0_29, %c0_30] : memref<1x32xf32, #tpu.memory_space<vmem>>, vector<1x32xf32>
    %80 = vector.broadcast %79 : vector<1x32xf32> to vector<8x32xf32>
    %81 = arith.addf %78, %80 : vector<8x32xf32>
    %82 = arith.addf %7, %81 : vector<8x32xf32>
    %c0_31 = arith.constant 0 : index
    %c0_32 = arith.constant 0 : index
    %83 = vector.load %arg11[%c0_31, %c0_32] : memref<1x32xf32, #tpu.memory_space<vmem>>, vector<1x32xf32>
    %c0_33 = arith.constant 0 : index
    %c0_34 = arith.constant 0 : index
    %84 = vector.load %arg12[%c0_33, %c0_34] : memref<1x32xf32, #tpu.memory_space<vmem>>, vector<1x32xf32>
    %cst_35 = arith.constant dense<0.000000e+00> : vector<8xf32>
    %85 = vector.multi_reduction <add>, %82, %cst_35 [1] : vector<8x32xf32> to vector<8xf32>
    %86 = vector.shape_cast %85 : vector<8xf32> to vector<8x1xf32>
    %cst_36 = arith.constant 3.200000e+01 : f32
    %87 = vector.broadcast %cst_36 : f32 to vector<8x1xf32>
    %88 = arith.divf %86, %87 : vector<8x1xf32>
    %89 = vector.broadcast %88 : vector<8x1xf32> to vector<8x32xf32>
    %90 = arith.subf %82, %89 : vector<8x32xf32>
    %91 = vector.broadcast %88 : vector<8x1xf32> to vector<8x32xf32>
    %92 = arith.subf %82, %91 : vector<8x32xf32>
    %93 = arith.mulf %90, %92 : vector<8x32xf32>
    %cst_37 = arith.constant dense<0.000000e+00> : vector<8xf32>
    %94 = vector.multi_reduction <add>, %93, %cst_37 [1] : vector<8x32xf32> to vector<8xf32>
    %95 = vector.shape_cast %94 : vector<8xf32> to vector<8x1xf32>
    %cst_38 = arith.constant 3.200000e+01 : f32
    %96 = vector.broadcast %cst_38 : f32 to vector<8x1xf32>
    %97 = arith.divf %95, %96 : vector<8x1xf32>
    %98 = vector.broadcast %88 : vector<8x1xf32> to vector<8x32xf32>
    %99 = arith.subf %82, %98 : vector<8x32xf32>
    %cst_39 = arith.constant 9.99999974E-6 : f32
    %100 = vector.broadcast %cst_39 : f32 to vector<8x1xf32>
    %101 = arith.addf %97, %100 : vector<8x1xf32>
    %102 = math.rsqrt %101 : vector<8x1xf32>
    %103 = vector.broadcast %102 : vector<8x1xf32> to vector<8x32xf32>
    %104 = arith.mulf %99, %103 : vector<8x32xf32>
    %105 = vector.broadcast %83 : vector<1x32xf32> to vector<8x32xf32>
    %106 = arith.mulf %104, %105 : vector<8x32xf32>
    %107 = vector.broadcast %84 : vector<1x32xf32> to vector<8x32xf32>
    %108 = arith.addf %106, %107 : vector<8x32xf32>
    %109 = arith.truncf %108 : vector<8x32xf32> to vector<8x32xbf16>
    %c0_40 = arith.constant 0 : index
    %c0_41 = arith.constant 0 : index
    %110 = vector.load %arg13[%c0_40, %c0_41] : memref<32x128xbf16, #tpu.memory_space<vmem>>, vector<32x128xbf16>
    %cst_42 = arith.constant dense<0.000000e+00> : vector<8x128xf32>
    %111 = tpu.matmul %109, %110, %cst_42 {dimension_numbers = #tpu.dot_dimension_numbers<[1], [0], [0], [1], [0, 0, 1, 1], [], []>} : vector<8x32xbf16>, vector<32x128xbf16>, vector<8x128xf32> -> vector<8x128xf32>
    %c0_43 = arith.constant 0 : index
    %c0_44 = arith.constant 0 : index
    %112 = vector.load %arg14[%c0_43, %c0_44] : memref<1x128xf32, #tpu.memory_space<vmem>>, vector<1x128xf32>
    %113 = vector.broadcast %112 : vector<1x128xf32> to vector<8x128xf32>
    %114 = arith.addf %111, %113 : vector<8x128xf32>
    %cst_45 = arith.constant 5.000000e-01 : f32
    %115 = vector.broadcast %cst_45 : f32 to vector<8x128xf32>
    %116 = arith.mulf %115, %114 : vector<8x128xf32>
    %cst_46 = arith.constant 0.707106769 : f32
    %117 = vector.broadcast %cst_46 : f32 to vector<8x128xf32>
    %118 = arith.mulf %114, %117 : vector<8x128xf32>
    %119 = math.erf %118 : vector<8x128xf32>
    %cst_47 = arith.constant 1.000000e+00 : f32
    %120 = vector.broadcast %cst_47 : f32 to vector<8x128xf32>
    %121 = arith.addf %120, %119 : vector<8x128xf32>
    %122 = arith.mulf %116, %121 : vector<8x128xf32>
    %123 = arith.truncf %122 : vector<8x128xf32> to vector<8x128xbf16>
    %c0_48 = arith.constant 0 : index
    %c0_49 = arith.constant 0 : index
    %124 = vector.load %arg15[%c0_48, %c0_49] : memref<128x32xbf16, #tpu.memory_space<vmem>>, vector<128x32xbf16>
    %cst_50 = arith.constant dense<0.000000e+00> : vector<8x32xf32>
    %125 = tpu.matmul %123, %124, %cst_50 {dimension_numbers = #tpu.dot_dimension_numbers<[1], [0], [0], [1], [0, 0, 1, 1], [], []>} : vector<8x128xbf16>, vector<128x32xbf16>, vector<8x32xf32> -> vector<8x32xf32>
    %c0_51 = arith.constant 0 : index
    %c0_52 = arith.constant 0 : index
    %126 = vector.load %arg16[%c0_51, %c0_52] : memref<1x32xf32, #tpu.memory_space<vmem>>, vector<1x32xf32>
    %127 = vector.broadcast %126 : vector<1x32xf32> to vector<8x32xf32>
    %128 = arith.addf %125, %127 : vector<8x32xf32>
    %129 = arith.addf %82, %128 : vector<8x32xf32>
    %c0_53 = arith.constant 0 : index
    %c0_54 = arith.constant 0 : index
    %c0_55 = arith.constant 0 : index
    %130 = vector.load %arg17[%c0_53, %c0_54, %c0_55] : memref<1x8x32xf32, #tpu.memory_space<vmem>>, vector<1x8x32xf32>
    %131 = vector.shape_cast %130 : vector<1x8x32xf32> to vector<8x32xf32>
    %132 = vector.shape_cast %129 : vector<8x32xf32> to vector<1x8x32xf32>
    tpu.vector_store %arg17[%c0_53, %c0_54, %c0_55], %132 {strides = array<i32>} : memref<1x8x32xf32, #tpu.memory_space<vmem>>, vector<1x8x32xf32>,
    return
  }
  func.func @transform_0(%arg0: i32, %arg1: i32) -> (i32, i32, i32) {
    %c0_i32 = arith.constant 0 : i32
    %c0_i32_0 = arith.constant 0 : i32
    %c0_i32_1 = arith.constant 0 : i32
    return %arg0, %c0_i32, %c0_i32_0 : i32, i32, i32
  }
  func.func @transform_1(%arg0: i32, %arg1: i32) -> (i32, i32) {
    %c0_i32 = arith.constant 0 : i32
    %c0_i32_0 = arith.constant 0 : i32
    %c0_i32_1 = arith.constant 0 : i32
    return %c0_i32, %c0_i32_0 : i32, i32
  }
  func.func @transform_2(%arg0: i32, %arg1: i32) -> (i32, i32) {
    %c0_i32 = arith.constant 0 : i32
    %c0_i32_0 = arith.constant 0 : i32
    %c0_i32_1 = arith.constant 0 : i32
    return %c0_i32, %c0_i32_0 : i32, i32
  }
  func.func @transform_3(%arg0: i32, %arg1: i32) -> (i32, i32) {
    %c0_i32 = arith.constant 0 : i32
    %c0_i32_0 = arith.constant 0 : i32
    %c0_i32_1 = arith.constant 0 : i32
    return %c0_i32, %c0_i32_0 : i32, i32
  }
  func.func @transform_4(%arg0: i32, %arg1: i32) -> (i32, i32) {
    %c0_i32 = arith.constant 0 : i32
    %c0_i32_0 = arith.constant 0 : i32
    %c0_i32_1 = arith.constant 0 : i32
    return %c0_i32, %c0_i32_0 : i32, i32
  }
  func.func @transform_5(%arg0: i32, %arg1: i32) -> (i32, i32) {
    %c0_i32 = arith.constant 0 : i32
    %c0_i32_0 = arith.constant 0 : i32
    %c0_i32_1 = arith.constant 0 : i32
    return %c0_i32, %c0_i32_0 : i32, i32
  }
  func.func @transform_6(%arg0: i32, %arg1: i32) -> (i32, i32) {
    %c0_i32 = arith.constant 0 : i32
    %c0_i32_0 = arith.constant 0 : i32
    %c0_i32_1 = arith.constant 0 : i32
    return %c0_i32, %c0_i32_0 : i32, i32
  }
  func.func @transform_7(%arg0: i32, %arg1: i32) -> (i32, i32) {
    %c0_i32 = arith.constant 0 : i32
    %c0_i32_0 = arith.constant 0 : i32
    %c0_i32_1 = arith.constant 0 : i32
    return %c0_i32, %c0_i32_0 : i32, i32
  }
  func.func @transform_8(%arg0: i32, %arg1: i32) -> (i32, i32) {
    %c0_i32 = arith.constant 0 : i32
    %c0_i32_0 = arith.constant 0 : i32
    %c0_i32_1 = arith.constant 0 : i32
    return %c0_i32, %c0_i32_0 : i32, i32
  }
  func.func @transform_9(%arg0: i32, %arg1: i32) -> (i32, i32) {
    %c0_i32 = arith.constant 0 : i32
    %c0_i32_0 = arith.constant 0 : i32
    %c0_i32_1 = arith.constant 0 : i32
    return %c0_i32, %c0_i32_0 : i32, i32
  }
  func.func @transform_10(%arg0: i32, %arg1: i32) -> (i32, i32) {
    %c0_i32 = arith.constant 0 : i32
    %c0_i32_0 = arith.constant 0 : i32
    %c0_i32_1 = arith.constant 0 : i32
    return %c0_i32, %c0_i32_0 : i32, i32
  }
  func.func @transform_11(%arg0: i32, %arg1: i32) -> (i32, i32) {
    %c0_i32 = arith.constant 0 : i32
    %c0_i32_0 = arith.constant 0 : i32
    %c0_i32_1 = arith.constant 0 : i32
    return %c0_i32, %c0_i32_0 : i32, i32
  }
  func.func @transform_12(%arg0: i32, %arg1: i32) -> (i32, i32) {
    %c0_i32 = arith.constant 0 : i32
    %c0_i32_0 = arith.constant 0 : i32
    %c0_i32_1 = arith.constant 0 : i32
    return %c0_i32, %c0_i32_0 : i32, i32
  }
  func.func @transform_13(%arg0: i32, %arg1: i32) -> (i32, i32) {
    %c0_i32 = arith.constant 0 : i32
    %c0_i32_0 = arith.constant 0 : i32
    %c0_i32_1 = arith.constant 0 : i32
    return %c0_i32, %c0_i32_0 : i32, i32
  }
  func.func @transform_14(%arg0: i32, %arg1: i32) -> (i32, i32) {
    %c0_i32 = arith.constant 0 : i32
    %c0_i32_0 = arith.constant 0 : i32
    %c0_i32_1 = arith.constant 0 : i32
    return %c0_i32, %c0_i32_0 : i32, i32
  }
  func.func @transform_15(%arg0: i32, %arg1: i32) -> (i32, i32, i32) {
    %c0_i32 = arith.constant 0 : i32
    %c0_i32_0 = arith.constant 0 : i32
    return %arg0, %arg1, %c0_i32 : i32, i32, i32
  }
}

module attributes {stable_mosaic.version = 11 : i64} {
  func.func @block_kernel(%arg0: i32, %arg1: i32, %arg2: memref<1x8x32xf32, #tpu.memory_space<vmem>>, %arg3: memref<1x32xf32, #tpu.memory_space<vmem>>, %arg4: memref<1x32xf32, #tpu.memory_space<vmem>>, %arg5: memref<32x32xbf16, #tpu.memory_space<vmem>>, %arg6: memref<1x32xf32, #tpu.memory_space<vmem>>, %arg7: memref<32x64xbf16, #tpu.memory_space<vmem>>, %arg8: memref<1x64xf32, #tpu.memory_space<vmem>>, %arg9: memref<32x32xbf16, #tpu.memory_space<vmem>>, %arg10: memref<1x32xf32, #tpu.memory_space<vmem>>, %arg11: memref<1x32xf32, #tpu.memory_space<vmem>>, %arg12: memref<1x32xf32, #tpu.memory_space<vmem>>, %arg13: memref<32x128xbf16, #tpu.memory_space<vmem>>, %arg14: memref<1x128xf32, #tpu.memory_space<vmem>>, %arg15: memref<128x32xbf16, #tpu.memory_space<vmem>>, %arg16: memref<1x32xf32, #tpu.memory_space<vmem>>, %arg17: memref<1x8x32xf32, #tpu.memory_space<vmem>>, %arg18: memref<4x8x8xbf16, #tpu.memory_space<vmem>>, %arg19: memref<4x8x8xbf16, #tpu.memory_space<vmem>>) attributes {dimension_semantics = [#tpu.dimension_semantics<parallel>, #tpu.dimension_semantics<arbitrary>], iteration_bounds = array<i64: 2, 1>, scalar_prefetch = 0 : i64, scratch_operands = 2 : i64, tpu.core_type = #tpu.core_type<tc>, window_params = [{transform_indices = @transform_0, window_bounds = array<i64: 1, 8, 32>}, {pipeline_mode = #tpu.pipeline_mode<synchronous>, transform_indices = @transform_1, window_bounds = array<i64: 1, 32>}, {pipeline_mode = #tpu.pipeline_mode<synchronous>, transform_indices = @transform_2, window_bounds = array<i64: 1, 32>}, {pipeline_mode = #tpu.pipeline_mode<synchronous>, transform_indices = @transform_3, window_bounds = array<i64: 32, 32>}, {pipeline_mode = #tpu.pipeline_mode<synchronous>, transform_indices = @transform_4, window_bounds = array<i64: 1, 32>}, {pipeline_mode = #tpu.pipeline_mode<synchronous>, transform_indices = @transform_5, window_bounds = array<i64: 32, 64>}, {pipeline_mode = #tpu.pipeline_mode<synchronous>, transform_indices = @transform_6, window_bounds = array<i64: 1, 64>}, {pipeline_mode = #tpu.pipeline_mode<synchronous>, transform_indices = @transform_7, window_bounds = array<i64: 32, 32>}, {pipeline_mode = #tpu.pipeline_mode<synchronous>, transform_indices = @transform_8, window_bounds = array<i64: 1, 32>}, {pipeline_mode = #tpu.pipeline_mode<synchronous>, transform_indices = @transform_9, window_bounds = array<i64: 1, 32>}, {pipeline_mode = #tpu.pipeline_mode<synchronous>, transform_indices = @transform_10, window_bounds = array<i64: 1, 32>}, {pipeline_mode = #tpu.pipeline_mode<synchronous>, transform_indices = @transform_11, window_bounds = array<i64: 32, 128>}, {pipeline_mode = #tpu.pipeline_mode<synchronous>, transform_indices = @transform_12, window_bounds = array<i64: 1, 128>}, {pipeline_mode = #tpu.pipeline_mode<synchronous>, transform_indices = @transform_13, window_bounds = array<i64: 128, 32>}, {pipeline_mode = #tpu.pipeline_mode<synchronous>, transform_indices = @transform_14, window_bounds = array<i64: 1, 32>}, {transform_indices = @transform_15, window_bounds = array<i64: 1, 8, 32>}]} {
    %c0_i32 = arith.constant 0 : i32
    %0 = arith.cmpi eq, %arg1, %c0_i32 : i32
    %1 = arith.extui %0 : i1 to i32
    %c0_i32_0 = arith.constant 0 : i32
    %2 = arith.cmpi ne, %1, %c0_i32_0 : i32
    scf.if %2 {
      %c0_56 = arith.constant 0 : index
      %c0_57 = arith.constant 0 : index
      %c0_58 = arith.constant 0 : index
      %133 = vector.load %arg2[%c0_56, %c0_57, %c0_58] : memref<1x8x32xf32, #tpu.memory_space<vmem>>, vector<1x8x32xf32>
      %134 = vector.shape_cast %133 : vector<1x8x32xf32> to vector<8x32xf32>
      %c0_59 = arith.constant 0 : index
      %c0_60 = arith.constant 0 : index
      %135 = vector.load %arg3[%c0_59, %c0_60] : memref<1x32xf32, #tpu.memory_space<vmem>>, vector<1x32xf32>
      %c0_61 = arith.constant 0 : index
      %c0_62 = arith.constant 0 : index
      %136 = vector.load %arg4[%c0_61, %c0_62] : memref<1x32xf32, #tpu.memory_space<vmem>>, vector<1x32xf32>
      %cst_63 = arith.constant dense<0.000000e+00> : vector<8xf32>
      %137 = vector.multi_reduction <add>, %134, %cst_63 [1] : vector<8x32xf32> to vector<8xf32>
      %138 = vector.shape_cast %137 : vector<8xf32> to vector<8x1xf32>
      %cst_64 = arith.constant 3.200000e+01 : f32
      %139 = vector.broadcast %cst_64 : f32 to vector<8x1xf32>
      %140 = arith.divf %138, %139 : vector<8x1xf32>
      %141 = vector.broadcast %140 : vector<8x1xf32> to vector<8x32xf32>
      %142 = arith.subf %134, %141 : vector<8x32xf32>
      %143 = vector.broadcast %140 : vector<8x1xf32> to vector<8x32xf32>
      %144 = arith.subf %134, %143 : vector<8x32xf32>
      %145 = arith.mulf %142, %144 : vector<8x32xf32>
      %cst_65 = arith.constant dense<0.000000e+00> : vector<8xf32>
      %146 = vector.multi_reduction <add>, %145, %cst_65 [1] : vector<8x32xf32> to vector<8xf32>
      %147 = vector.shape_cast %146 : vector<8xf32> to vector<8x1xf32>
      %cst_66 = arith.constant 3.200000e+01 : f32
      %148 = vector.broadcast %cst_66 : f32 to vector<8x1xf32>
      %149 = arith.divf %147, %148 : vector<8x1xf32>
      %150 = vector.broadcast %140 : vector<8x1xf32> to vector<8x32xf32>
      %151 = arith.subf %134, %150 : vector<8x32xf32>
      %cst_67 = arith.constant 9.99999974E-6 : f32
      %152 = vector.broadcast %cst_67 : f32 to vector<8x1xf32>
      %153 = arith.addf %149, %152 : vector<8x1xf32>
      %154 = math.rsqrt %153 : vector<8x1xf32>
      %155 = vector.broadcast %154 : vector<8x1xf32> to vector<8x32xf32>
      %156 = arith.mulf %151, %155 : vector<8x32xf32>
      %157 = vector.broadcast %135 : vector<1x32xf32> to vector<8x32xf32>
      %158 = arith.mulf %156, %157 : vector<8x32xf32>
      %159 = vector.broadcast %136 : vector<1x32xf32> to vector<8x32xf32>
      %160 = arith.addf %158, %159 : vector<8x32xf32>
      %161 = arith.truncf %160 : vector<8x32xf32> to vector<8x32xbf16>
      %c0_68 = arith.constant 0 : index
      %c0_69 = arith.constant 0 : index
      %162 = vector.load %arg7[%c0_68, %c0_69] : memref<32x64xbf16, #tpu.memory_space<vmem>>, vector<32x64xbf16>
      %cst_70 = arith.constant dense<0.000000e+00> : vector<8x64xf32>
      %163 = tpu.matmul %161, %162, %cst_70 {dimension_numbers = #tpu.dot_dimension_numbers<[1], [0], [0], [1], [0, 0, 1, 1], [], []>} : vector<8x32xbf16>, vector<32x64xbf16>, vector<8x64xf32> -> vector<8x64xf32>
      %c0_71 = arith.constant 0 : index
      %c0_72 = arith.constant 0 : index
      %164 = vector.load %arg8[%c0_71, %c0_72] : memref<1x64xf32, #tpu.memory_space<vmem>>, vector<1x64xf32>
      %165 = vector.broadcast %164 : vector<1x64xf32> to vector<8x64xf32>
      %166 = arith.addf %163, %165 : vector<8x64xf32>
      %167 = arith.truncf %166 : vector<8x64xf32> to vector<8x64xbf16>
      %168 = vector.extract_strided_slice %167 {offsets = [0, 0], sizes = [8, 8], strides = [1, 1]} : vector<8x64xbf16> to vector<8x8xbf16>
      %c0_73 = arith.constant 0 : index
      %c0_74 = arith.constant 0 : index
      %c0_75 = arith.constant 0 : index
      %169 = vector.load %arg18[%c0_73, %c0_74, %c0_75] : memref<4x8x8xbf16, #tpu.memory_space<vmem>>, vector<1x8x8xbf16>
      %170 = vector.shape_cast %169 : vector<1x8x8xbf16> to vector<8x8xbf16>
      %171 = vector.shape_cast %168 : vector<8x8xbf16> to vector<1x8x8xbf16>
      tpu.vector_store %arg18[%c0_73, %c0_74, %c0_75], %171 {strides = array<i32>} : memref<4x8x8xbf16, #tpu.memory_space<vmem>>, vector<1x8x8xbf16>,
      %172 = vector.extract_strided_slice %167 {offsets = [0, 32], sizes = [8, 8], strides = [1, 1]} : vector<8x64xbf16> to vector<8x8xbf16>
      %c0_76 = arith.constant 0 : index
      %c0_77 = arith.constant 0 : index
      %c0_78 = arith.constant 0 : index
      %173 = vector.load %arg19[%c0_76, %c0_77, %c0_78] : memref<4x8x8xbf16, #tpu.memory_space<vmem>>, vector<1x8x8xbf16>
      %174 = vector.shape_cast %173 : vector<1x8x8xbf16> to vector<8x8xbf16>
      %175 = vector.shape_cast %172 : vector<8x8xbf16> to vector<1x8x8xbf16>
      tpu.vector_store %arg19[%c0_76, %c0_77, %c0_78], %175 {strides = array<i32>} : memref<4x8x8xbf16, #tpu.memory_space<vmem>>, vector<1x8x8xbf16>,
      %176 = vector.extract_strided_slice %167 {offsets = [0, 8], sizes = [8, 8], strides = [1, 1]} : vector<8x64xbf16> to vector<8x8xbf16>
      %c1 = arith.constant 1 : index
      %c0_79 = arith.constant 0 : index
      %c0_80 = arith.constant 0 : index
      %177 = vector.load %arg18[%c1, %c0_79, %c0_80] : memref<4x8x8xbf16, #tpu.memory_space<vmem>>, vector<1x8x8xbf16>
      %178 = vector.shape_cast %177 : vector<1x8x8xbf16> to vector<8x8xbf16>
      %179 = vector.shape_cast %176 : vector<8x8xbf16> to vector<1x8x8xbf16>
      tpu.vector_store %arg18[%c1, %c0_79, %c0_80], %179 {strides = array<i32>} : memref<4x8x8xbf16, #tpu.memory_space<vmem>>, vector<1x8x8xbf16>,
      %180 = vector.extract_strided_slice %167 {offsets = [0, 40], sizes = [8, 8], strides = [1, 1]} : vector<8x64xbf16> to vector<8x8xbf16>
      %c1_81 = arith.constant 1 : index
      %c0_82 = arith.constant 0 : index
      %c0_83 = arith.constant 0 : index
      %181 = vector.load %arg19[%c1_81, %c0_82, %c0_83] : memref<4x8x8xbf16, #tpu.memory_space<vmem>>, vector<1x8x8xbf16>
      %182 = vector.shape_cast %181 : vector<1x8x8xbf16> to vector<8x8xbf16>
      %183 = vector.shape_cast %180 : vector<8x8xbf16> to vector<1x8x8xbf16>
      tpu.vector_store %arg19[%c1_81, %c0_82, %c0_83], %183 {strides = array<i32>} : memref<4x8x8xbf16, #tpu.memory_space<vmem>>, vector<1x8x8xbf16>,
      %184 = vector.extract_strided_slice %167 {offsets = [0, 16], sizes = [8, 8], strides = [1, 1]} : vector<8x64xbf16> to vector<8x8xbf16>
      %c2 = arith.constant 2 : index
      %c0_84 = arith.constant 0 : index
      %c0_85 = arith.constant 0 : index
      %185 = vector.load %arg18[%c2, %c0_84, %c0_85] : memref<4x8x8xbf16, #tpu.memory_space<vmem>>, vector<1x8x8xbf16>
      %186 = vector.shape_cast %185 : vector<1x8x8xbf16> to vector<8x8xbf16>
      %187 = vector.shape_cast %184 : vector<8x8xbf16> to vector<1x8x8xbf16>
      tpu.vector_store %arg18[%c2, %c0_84, %c0_85], %187 {strides = array<i32>} : memref<4x8x8xbf16, #tpu.memory_space<vmem>>, vector<1x8x8xbf16>,
      %188 = vector.extract_strided_slice %167 {offsets = [0, 48], sizes = [8, 8], strides = [1, 1]} : vector<8x64xbf16> to vector<8x8xbf16>
      %c2_86 = arith.constant 2 : index
      %c0_87 = arith.constant 0 : index
      %c0_88 = arith.constant 0 : index
      %189 = vector.load %arg19[%c2_86, %c0_87, %c0_88] : memref<4x8x8xbf16, #tpu.memory_space<vmem>>, vector<1x8x8xbf16>
      %190 = vector.shape_cast %189 : vector<1x8x8xbf16> to vector<8x8xbf16>
      %191 = vector.shape_cast %188 : vector<8x8xbf16> to vector<1x8x8xbf16>
      tpu.vector_store %arg19[%c2_86, %c0_87, %c0_88], %191 {strides = array<i32>} : memref<4x8x8xbf16, #tpu.memory_space<vmem>>, vector<1x8x8xbf16>,
      %192 = vector.extract_strided_slice %167 {offsets = [0, 24], sizes = [8, 8], strides = [1, 1]} : vector<8x64xbf16> to vector<8x8xbf16>
      %c3 = arith.constant 3 : index
      %c0_89 = arith.constant 0 : index
      %c0_90 = arith.constant 0 : index
      %193 = vector.load %arg18[%c3, %c0_89, %c0_90] : memref<4x8x8xbf16, #tpu.memory_space<vmem>>, vector<1x8x8xbf16>
      %194 = vector.shape_cast %193 : vector<1x8x8xbf16> to vector<8x8xbf16>
      %195 = vector.shape_cast %192 : vector<8x8xbf16> to vector<1x8x8xbf16>
      tpu.vector_store %arg18[%c3, %c0_89, %c0_90], %195 {strides = array<i32>} : memref<4x8x8xbf16, #tpu.memory_space<vmem>>, vector<1x8x8xbf16>,
      %196 = vector.extract_strided_slice %167 {offsets = [0, 56], sizes = [8, 8], strides = [1, 1]} : vector<8x64xbf16> to vector<8x8xbf16>
      %c3_91 = arith.constant 3 : index
      %c0_92 = arith.constant 0 : index
      %c0_93 = arith.constant 0 : index
      %197 = vector.load %arg19[%c3_91, %c0_92, %c0_93] : memref<4x8x8xbf16, #tpu.memory_space<vmem>>, vector<1x8x8xbf16>
      %198 = vector.shape_cast %197 : vector<1x8x8xbf16> to vector<8x8xbf16>
      %199 = vector.shape_cast %196 : vector<8x8xbf16> to vector<1x8x8xbf16>
      tpu.vector_store %arg19[%c3_91, %c0_92, %c0_93], %199 {strides = array<i32>} : memref<4x8x8xbf16, #tpu.memory_space<vmem>>, vector<1x8x8xbf16>,
    } else {
    }
    %c8_i32 = arith.constant 8 : i32
    %3 = arith.muli %arg1, %c8_i32 : i32
    %4 = tpu.assume_multiple %3, 8 : i32
    %c0 = arith.constant 0 : index
    %5 = arith.index_cast %4 : i32 to index
    %c0_1 = arith.constant 0 : index
    %6 = vector.load %arg2[%c0, %5, %c0_1] : memref<1x8x32xf32, #tpu.memory_space<vmem>>, vector<1x8x32xf32>
    %7 = vector.shape_cast %6 : vector<1x8x32xf32> to vector<8x32xf32>
    %c0_2 = arith.constant 0 : index
    %c0_3 = arith.constant 0 : index
    %8 = vector.load %arg3[%c0_2, %c0_3] : memref<1x32xf32, #tpu.memory_space<vmem>>, vector<1x32xf32>
    %c0_4 = arith.constant 0 : index
    %c0_5 = arith.constant 0 : index
    %9 = vector.load %arg4[%c0_4, %c0_5] : memref<1x32xf32, #tpu.memory_space<vmem>>, vector<1x32xf32>
    %cst = arith.constant dense<0.000000e+00> : vector<8xf32>
    %10 = vector.multi_reduction <add>, %7, %cst [1] : vector<8x32xf32> to vector<8xf32>
    %11 = vector.shape_cast %10 : vector<8xf32> to vector<8x1xf32>
    %cst_6 = arith.constant 3.200000e+01 : f32
    %12 = vector.broadcast %cst_6 : f32 to vector<8x1xf32>
    %13 = arith.divf %11, %12 : vector<8x1xf32>
    %14 = vector.broadcast %13 : vector<8x1xf32> to vector<8x32xf32>
    %15 = arith.subf %7, %14 : vector<8x32xf32>
    %16 = vector.broadcast %13 : vector<8x1xf32> to vector<8x32xf32>
    %17 = arith.subf %7, %16 : vector<8x32xf32>
    %18 = arith.mulf %15, %17 : vector<8x32xf32>
    %cst_7 = arith.constant dense<0.000000e+00> : vector<8xf32>
    %19 = vector.multi_reduction <add>, %18, %cst_7 [1] : vector<8x32xf32> to vector<8xf32>
    %20 = vector.shape_cast %19 : vector<8xf32> to vector<8x1xf32>
    %cst_8 = arith.constant 3.200000e+01 : f32
    %21 = vector.broadcast %cst_8 : f32 to vector<8x1xf32>
    %22 = arith.divf %20, %21 : vector<8x1xf32>
    %23 = vector.broadcast %13 : vector<8x1xf32> to vector<8x32xf32>
    %24 = arith.subf %7, %23 : vector<8x32xf32>
    %cst_9 = arith.constant 9.99999974E-6 : f32
    %25 = vector.broadcast %cst_9 : f32 to vector<8x1xf32>
    %26 = arith.addf %22, %25 : vector<8x1xf32>
    %27 = math.rsqrt %26 : vector<8x1xf32>
    %28 = vector.broadcast %27 : vector<8x1xf32> to vector<8x32xf32>
    %29 = arith.mulf %24, %28 : vector<8x32xf32>
    %30 = vector.broadcast %8 : vector<1x32xf32> to vector<8x32xf32>
    %31 = arith.mulf %29, %30 : vector<8x32xf32>
    %32 = vector.broadcast %9 : vector<1x32xf32> to vector<8x32xf32>
    %33 = arith.addf %31, %32 : vector<8x32xf32>
    %34 = arith.truncf %33 : vector<8x32xf32> to vector<8x32xbf16>
    %c0_10 = arith.constant 0 : index
    %c0_11 = arith.constant 0 : index
    %35 = vector.load %arg5[%c0_10, %c0_11] : memref<32x32xbf16, #tpu.memory_space<vmem>>, vector<32x32xbf16>
    %cst_12 = arith.constant dense<0.000000e+00> : vector<8x32xf32>
    %36 = tpu.matmul %34, %35, %cst_12 {dimension_numbers = #tpu.dot_dimension_numbers<[1], [0], [0], [1], [0, 0, 1, 1], [], []>} : vector<8x32xbf16>, vector<32x32xbf16>, vector<8x32xf32> -> vector<8x32xf32>
    %c0_13 = arith.constant 0 : index
    %c0_14 = arith.constant 0 : index
    %37 = vector.load %arg6[%c0_13, %c0_14] : memref<1x32xf32, #tpu.memory_space<vmem>>, vector<1x32xf32>
    %38 = vector.broadcast %37 : vector<1x32xf32> to vector<8x32xf32>
    %39 = arith.addf %36, %38 : vector<8x32xf32>
    %cst_15 = arith.constant 0.353553385 : f32
    %40 = vector.broadcast %cst_15 : f32 to vector<8x32xf32>
    %41 = arith.mulf %39, %40 : vector<8x32xf32>
    %42 = arith.truncf %41 : vector<8x32xf32> to vector<8x32xbf16>
    %43 = vector.extract_strided_slice %42 {offsets = [0, 0], sizes = [8, 8], strides = [1, 1]} : vector<8x32xbf16> to vector<8x8xbf16>
    %44 = vector.extract_strided_slice %42 {offsets = [0, 8], sizes = [8, 8], strides = [1, 1]} : vector<8x32xbf16> to vector<8x8xbf16>
    %45 = vector.extract_strided_slice %42 {offsets = [0, 16], sizes = [8, 8], strides = [1, 1]} : vector<8x32xbf16> to vector<8x8xbf16>
    %46 = vector.extract_strided_slice %42 {offsets = [0, 24], sizes = [8, 8], strides = [1, 1]} : vector<8x32xbf16> to vector<8x8xbf16>
    %47 = vector.shape_cast %43 : vector<8x8xbf16> to vector<1x8x8xbf16>
    %48 = vector.shape_cast %44 : vector<8x8xbf16> to vector<1x8x8xbf16>
    %49 = vector.shape_cast %45 : vector<8x8xbf16> to vector<1x8x8xbf16>
    %50 = vector.shape_cast %46 : vector<8x8xbf16> to vector<1x8x8xbf16>
    %51 = tpu.concatenate %47, %48, %49, %50 in 0 : vector<1x8x8xbf16>, vector<1x8x8xbf16>, vector<1x8x8xbf16>, vector<1x8x8xbf16> -> vector<4x8x8xbf16>
    %c0_16 = arith.constant 0 : index
    %c0_17 = arith.constant 0 : index
    %c0_18 = arith.constant 0 : index
    %52 = vector.load %arg18[%c0_16, %c0_17, %c0_18] : memref<4x8x8xbf16, #tpu.memory_space<vmem>>, vector<4x8x8xbf16>
    "tpu.trace_start"() <{level = 10 : i32, message = "hqd,hkd->hqk"}> : () -> ()
    %cst_19 = arith.constant dense<0.000000e+00> : vector<4x8x8xf32>
    %53 = tpu.matmul %51, %52, %cst_19 {dimension_numbers = #tpu.dot_dimension_numbers<[2], [2], [1], [1], [0, 0, 0, 1, 1, 1], [0], [0]>} : vector<4x8x8xbf16>, vector<4x8x8xbf16>, vector<4x8x8xf32> -> vector<4x8x8xf32>
    "tpu.trace_stop"() : () -> ()
    %cst_20 = arith.constant dense<0xFF800000> : vector<4x8xf32>
    %54 = vector.multi_reduction <maximumf>, %53, %cst_20 [2] : vector<4x8x8xf32> to vector<4x8xf32>
    %55 = vector.shape_cast %54 : vector<4x8xf32> to vector<4x8x1xf32>
    %56 = vector.broadcast %55 : vector<4x8x1xf32> to vector<4x8x8xf32>
    %57 = arith.subf %53, %56 : vector<4x8x8xf32>
    %58 = math.exp %57 : vector<4x8x8xf32>
    %cst_21 = arith.constant dense<0.000000e+00> : vector<4x8xf32>
    %59 = vector.multi_reduction <add>, %58, %cst_21 [2] : vector<4x8x8xf32> to vector<4x8xf32>
    %60 = vector.shape_cast %59 : vector<4x8xf32> to vector<4x8x1xf32>
    %61 = tpu.reciprocal %60 {approx = true} : vector<4x8x1xf32> -> vector<4x8x1xf32>
    %62 = vector.broadcast %61 : vector<4x8x1xf32> to vector<4x8x8xf32>
    %63 = arith.mulf %58, %62 : vector<4x8x8xf32>
    %64 = arith.truncf %63 : vector<4x8x8xf32> to vector<4x8x8xbf16>
    %c0_22 = arith.constant 0 : index
    %c0_23 = arith.constant 0 : index
    %c0_24 = arith.constant 0 : index
    %65 = vector.load %arg19[%c0_22, %c0_23, %c0_24] : memref<4x8x8xbf16, #tpu.memory_space<vmem>>, vector<4x8x8xbf16>
    "tpu.trace_start"() <{level = 10 : i32, message = "hqk,hkd->hqd"}> : () -> ()
    %cst_25 = arith.constant dense<0.000000e+00> : vector<4x8x8xf32>
    %66 = tpu.matmul %64, %65, %cst_25 {dimension_numbers = #tpu.dot_dimension_numbers<[2], [1], [1], [2], [0, 0, 0, 1, 1, 2], [0], [0]>} : vector<4x8x8xbf16>, vector<4x8x8xbf16>, vector<4x8x8xf32> -> vector<4x8x8xf32>
    "tpu.trace_stop"() : () -> ()
    %67 = vector.extract_strided_slice %66 {offsets = [0, 0, 0], sizes = [1, 8, 8], strides = [1, 1, 1]} : vector<4x8x8xf32> to vector<1x8x8xf32>
    %68 = vector.shape_cast %67 : vector<1x8x8xf32> to vector<8x8xf32>
    %69 = vector.extract_strided_slice %66 {offsets = [1, 0, 0], sizes = [1, 8, 8], strides = [1, 1, 1]} : vector<4x8x8xf32> to vector<1x8x8xf32>
    %70 = vector.shape_cast %69 : vector<1x8x8xf32> to vector<8x8xf32>
    %71 = vector.extract_strided_slice %66 {offsets = [2, 0, 0], sizes = [1, 8, 8], strides = [1, 1, 1]} : vector<4x8x8xf32> to vector<1x8x8xf32>
    %72 = vector.shape_cast %71 : vector<1x8x8xf32> to vector<8x8xf32>
    %73 = vector.extract_strided_slice %66 {offsets = [3, 0, 0], sizes = [1, 8, 8], strides = [1, 1, 1]} : vector<4x8x8xf32> to vector<1x8x8xf32>
    %74 = vector.shape_cast %73 : vector<1x8x8xf32> to vector<8x8xf32>
    %75 = tpu.concatenate %68, %70, %72, %74 in 1 : vector<8x8xf32>, vector<8x8xf32>, vector<8x8xf32>, vector<8x8xf32> -> vector<8x32xf32>
    %76 = arith.truncf %75 : vector<8x32xf32> to vector<8x32xbf16>
    %c0_26 = arith.constant 0 : index
    %c0_27 = arith.constant 0 : index
    %77 = vector.load %arg9[%c0_26, %c0_27] : memref<32x32xbf16, #tpu.memory_space<vmem>>, vector<32x32xbf16>
    %cst_28 = arith.constant dense<0.000000e+00> : vector<8x32xf32>
    %78 = tpu.matmul %76, %77, %cst_28 {dimension_numbers = #tpu.dot_dimension_numbers<[1], [0], [0], [1], [0, 0, 1, 1], [], []>} : vector<8x32xbf16>, vector<32x32xbf16>, vector<8x32xf32> -> vector<8x32xf32>
    %c0_29 = arith.constant 0 : index
    %c0_30 = arith.constant 0 : index
    %79 = vector.load %arg10[%c0_29, %c0_30] : memref<1x32xf32, #tpu.memory_space<vmem>>, vector<1x32xf32>
    %80 = vector.broadcast %79 : vector<1x32xf32> to vector<8x32xf32>
    %81 = arith.addf %78, %80 : vector<8x32xf32>
    %82 = arith.addf %7, %81 : vector<8x32xf32>
    %c0_31 = arith.constant 0 : index
    %c0_32 = arith.constant 0 : index
    %83 = vector.load %arg11[%c0_31, %c0_32] : memref<1x32xf32, #tpu.memory_space<vmem>>, vector<1x32xf32>
    %c0_33 = arith.constant 0 : index
    %c0_34 = arith.constant 0 : index
    %84 = vector.load %arg12[%c0_33, %c0_34] : memref<1x32xf32, #tpu.memory_space<vmem>>, vector<1x32xf32>
    %cst_35 = arith.constant dense<0.000000e+00> : vector<8xf32>
    %85 = vector.multi_reduction <add>, %82, %cst_35 [1] : vector<8x32xf32> to vector<8xf32>
    %86 = vector.shape_cast %85 : vector<8xf32> to vector<8x1xf32>
    %cst_36 = arith.constant 3.200000e+01 : f32
    %87 = vector.broadcast %cst_36 : f32 to vector<8x1xf32>
    %88 = arith.divf %86, %87 : vector<8x1xf32>
    %89 = vector.broadcast %88 : vector<8x1xf32> to vector<8x32xf32>
    %90 = arith.subf %82, %89 : vector<8x32xf32>
    %91 = vector.broadcast %88 : vector<8x1xf32> to vector<8x32xf32>
    %92 = arith.subf %82, %91 : vector<8x32xf32>
    %93 = arith.mulf %90, %92 : vector<8x32xf32>
    %cst_37 = arith.constant dense<0.000000e+00> : vector<8xf32>
    %94 = vector.multi_reduction <add>, %93, %cst_37 [1] : vector<8x32xf32> to vector<8xf32>
    %95 = vector.shape_cast %94 : vector<8xf32> to vector<8x1xf32>
    %cst_38 = arith.constant 3.200000e+01 : f32
    %96 = vector.broadcast %cst_38 : f32 to vector<8x1xf32>
    %97 = arith.divf %95, %96 : vector<8x1xf32>
    %98 = vector.broadcast %88 : vector<8x1xf32> to vector<8x32xf32>
    %99 = arith.subf %82, %98 : vector<8x32xf32>
    %cst_39 = arith.constant 9.99999974E-6 : f32
    %100 = vector.broadcast %cst_39 : f32 to vector<8x1xf32>
    %101 = arith.addf %97, %100 : vector<8x1xf32>
    %102 = math.rsqrt %101 : vector<8x1xf32>
    %103 = vector.broadcast %102 : vector<8x1xf32> to vector<8x32xf32>
    %104 = arith.mulf %99, %103 : vector<8x32xf32>
    %105 = vector.broadcast %83 : vector<1x32xf32> to vector<8x32xf32>
    %106 = arith.mulf %104, %105 : vector<8x32xf32>
    %107 = vector.broadcast %84 : vector<1x32xf32> to vector<8x32xf32>
    %108 = arith.addf %106, %107 : vector<8x32xf32>
    %109 = arith.truncf %108 : vector<8x32xf32> to vector<8x32xbf16>
    %c0_40 = arith.constant 0 : index
    %c0_41 = arith.constant 0 : index
    %110 = vector.load %arg13[%c0_40, %c0_41] : memref<32x128xbf16, #tpu.memory_space<vmem>>, vector<32x128xbf16>
    %cst_42 = arith.constant dense<0.000000e+00> : vector<8x128xf32>
    %111 = tpu.matmul %109, %110, %cst_42 {dimension_numbers = #tpu.dot_dimension_numbers<[1], [0], [0], [1], [0, 0, 1, 1], [], []>} : vector<8x32xbf16>, vector<32x128xbf16>, vector<8x128xf32> -> vector<8x128xf32>
    %c0_43 = arith.constant 0 : index
    %c0_44 = arith.constant 0 : index
    %112 = vector.load %arg14[%c0_43, %c0_44] : memref<1x128xf32, #tpu.memory_space<vmem>>, vector<1x128xf32>
    %113 = vector.broadcast %112 : vector<1x128xf32> to vector<8x128xf32>
    %114 = arith.addf %111, %113 : vector<8x128xf32>
    %cst_45 = arith.constant 5.000000e-01 : f32
    %115 = vector.broadcast %cst_45 : f32 to vector<8x128xf32>
    %116 = arith.mulf %115, %114 : vector<8x128xf32>
    %cst_46 = arith.constant 0.707106769 : f32
    %117 = vector.broadcast %cst_46 : f32 to vector<8x128xf32>
    %118 = arith.mulf %114, %117 : vector<8x128xf32>
    %119 = math.erf %118 : vector<8x128xf32>
    %cst_47 = arith.constant 1.000000e+00 : f32
    %120 = vector.broadcast %cst_47 : f32 to vector<8x128xf32>
    %121 = arith.addf %120, %119 : vector<8x128xf32>
    %122 = arith.mulf %116, %121 : vector<8x128xf32>
    %123 = arith.truncf %122 : vector<8x128xf32> to vector<8x128xbf16>
    %c0_48 = arith.constant 0 : index
    %c0_49 = arith.constant 0 : index
    %124 = vector.load %arg15[%c0_48, %c0_49] : memref<128x32xbf16, #tpu.memory_space<vmem>>, vector<128x32xbf16>
    %cst_50 = arith.constant dense<0.000000e+00> : vector<8x32xf32>
    %125 = tpu.matmul %123, %124, %cst_50 {dimension_numbers = #tpu.dot_dimension_numbers<[1], [0], [0], [1], [0, 0, 1, 1], [], []>} : vector<8x128xbf16>, vector<128x32xbf16>, vector<8x32xf32> -> vector<8x32xf32>
    %c0_51 = arith.constant 0 : index
    %c0_52 = arith.constant 0 : index
    %126 = vector.load %arg16[%c0_51, %c0_52] : memref<1x32xf32, #tpu.memory_space<vmem>>, vector<1x32xf32>
    %127 = vector.broadcast %126 : vector<1x32xf32> to vector<8x32xf32>
    %128 = arith.addf %125, %127 : vector<8x32xf32>
    %129 = arith.addf %82, %128 : vector<8x32xf32>
    %c0_53 = arith.constant 0 : index
    %c0_54 = arith.constant 0 : index
    %c0_55 = arith.constant 0 : index
    %130 = vector.load %arg17[%c0_53, %c0_54, %c0_55] : memref<1x8x32xf32, #tpu.memory_space<vmem>>, vector<1x8x32xf32>
    %131 = vector.shape_cast %130 : vector<1x8x32xf32> to vector<8x32xf32>
    %132 = vector.shape_cast %129 : vector<8x32xf32> to vector<1x8x32xf32>
    tpu.vector_store %arg17[%c0_53, %c0_54, %c0_55], %132 {strides = array<i32>} : memref<1x8x32xf32, #tpu.memory_space<vmem>>, vector<1x8x32xf32>,
    return
  }
  func.func @transform_0(%arg0: i32, %arg1: i32) -> (i32, i32, i32) {
    %c0_i32 = arith.constant 0 : i32
    %c0_i32_0 = arith.constant 0 : i32
    %c0_i32_1 = arith.constant 0 : i32
    return %arg0, %c0_i32, %c0_i32_0 : i32, i32, i32
  }
  func.func @transform_1(%arg0: i32, %arg1: i32) -> (i32, i32) {
    %c0_i32 = arith.constant 0 : i32
    %c0_i32_0 = arith.constant 0 : i32
    %c0_i32_1 = arith.constant 0 : i32
    return %c0_i32, %c0_i32_0 : i32, i32
  }
  func.func @transform_2(%arg0: i32, %arg1: i32) -> (i32, i32) {
    %c0_i32 = arith.constant 0 : i32
    %c0_i32_0 = arith.constant 0 : i32
    %c0_i32_1 = arith.constant 0 : i32
    return %c0_i32, %c0_i32_0 : i32, i32
  }
  func.func @transform_3(%arg0: i32, %arg1: i32) -> (i32, i32) {
    %c0_i32 = arith.constant 0 : i32
    %c0_i32_0 = arith.constant 0 : i32
    %c0_i32_1 = arith.constant 0 : i32
    return %c0_i32, %c0_i32_0 : i32, i32
  }
  func.func @transform_4(%arg0: i32, %arg1: i32) -> (i32, i32) {
    %c0_i32 = arith.constant 0 : i32
    %c0_i32_0 = arith.constant 0 : i32
    %c0_i32_1 = arith.constant 0 : i32
    return %c0_i32, %c0_i32_0 : i32, i32
  }
  func.func @transform_5(%arg0: i32, %arg1: i32) -> (i32, i32) {
    %c0_i32 = arith.constant 0 : i32
    %c0_i32_0 = arith.constant 0 : i32
    %c0_i32_1 = arith.constant 0 : i32
    return %c0_i32, %c0_i32_0 : i32, i32
  }
  func.func @transform_6(%arg0: i32, %arg1: i32) -> (i32, i32) {
    %c0_i32 = arith.constant 0 : i32
    %c0_i32_0 = arith.constant 0 : i32
    %c0_i32_1 = arith.constant 0 : i32
    return %c0_i32, %c0_i32_0 : i32, i32
  }
  func.func @transform_7(%arg0: i32, %arg1: i32) -> (i32, i32) {
    %c0_i32 = arith.constant 0 : i32
    %c0_i32_0 = arith.constant 0 : i32
    %c0_i32_1 = arith.constant 0 : i32
    return %c0_i32, %c0_i32_0 : i32, i32
  }
  func.func @transform_8(%arg0: i32, %arg1: i32) -> (i32, i32) {
    %c0_i32 = arith.constant 0 : i32
    %c0_i32_0 = arith.constant 0 : i32
    %c0_i32_1 = arith.constant 0 : i32
    return %c0_i32, %c0_i32_0 : i32, i32
  }
  func.func @transform_9(%arg0: i32, %arg1: i32) -> (i32, i32) {
    %c0_i32 = arith.constant 0 : i32
    %c0_i32_0 = arith.constant 0 : i32
    %c0_i32_1 = arith.constant 0 : i32
    return %c0_i32, %c0_i32_0 : i32, i32
  }
  func.func @transform_10(%arg0: i32, %arg1: i32) -> (i32, i32) {
    %c0_i32 = arith.constant 0 : i32
    %c0_i32_0 = arith.constant 0 : i32
    %c0_i32_1 = arith.constant 0 : i32
    return %c0_i32, %c0_i32_0 : i32, i32
  }
  func.func @transform_11(%arg0: i32, %arg1: i32) -> (i32, i32) {
    %c0_i32 = arith.constant 0 : i32
    %c0_i32_0 = arith.constant 0 : i32
    %c0_i32_1 = arith.constant 0 : i32
    return %c0_i32, %c0_i32_0 : i32, i32
  }
  func.func @transform_12(%arg0: i32, %arg1: i32) -> (i32, i32) {
    %c0_i32 = arith.constant 0 : i32
    %c0_i32_0 = arith.constant 0 : i32
    %c0_i32_1 = arith.constant 0 : i32
    return %c0_i32, %c0_i32_0 : i32, i32
  }
  func.func @transform_13(%arg0: i32, %arg1: i32) -> (i32, i32) {
    %c0_i32 = arith.constant 0 : i32
    %c0_i32_0 = arith.constant 0 : i32
    %c0_i32_1 = arith.constant 0 : i32
    return %c0_i32, %c0_i32_0 : i32, i32
  }
  func.func @transform_14(%arg0: i32, %arg1: i32) -> (i32, i32) {
    %c0_i32 = arith.constant 0 : i32
    %c0_i32_0 = arith.constant 0 : i32
    %c0_i32_1 = arith.constant 0 : i32
    return %c0_i32, %c0_i32_0 : i32, i32
  }
  func.func @transform_15(%arg0: i32, %arg1: i32) -> (i32, i32, i32) {
    %c0_i32 = arith.constant 0 : i32
    %c0_i32_0 = arith.constant 0 : i32
    return %arg0, %arg1, %c0_i32 : i32, i32, i32
  }
}

</mosaic_0001>

<bundles_post_ra>
// kernel: tpu_custom_call.1
= control target key start
LH: loop header
LB: loop body
LE: loop exit
PB: predicated region body
PF: predicated region fallthrough
CT: control target
= control target key end

     0   :  { %s1963_s0 = inlined_call_operand.vmem [shape: f32[2,8,32], index: 0, kind: input, shape index: {}]   ;;  %s1964_s1 = inlined_call_operand.hbm [shape: f32[1,32], index: 1, kind: input, shape index: {}]   ;;  %s1965_s2 = inlined_call_operand.vmem [shape: f32[1,32], index: 2, kind: input, shape index: {}]   ;;  %s1966_s3 = inlined_call_operand.vmem [shape: bf16[32,32], index: 3, kind: input, shape index: {}]   ;;  %s1967_s4 = inlined_call_operand.vmem [shape: f32[1,32], index: 4, kind: input, shape index: {}]   ;;  %s1968_s5 = inlined_call_operand.vmem [shape: bf16[32,64], index: 5, kind: input, shape index: {}]   ;;  %s1969_s6 = inlined_call_operand.vmem [shape: f32[1,64], index: 6, kind: input, shape index: {}]   ;;  %s1970_s7 = inlined_call_operand.vmem [shape: bf16[32,32], index: 7, kind: input, shape index: {}]   ;;  %s1971_s8 = inlined_call_operand.vmem [shape: f32[1,32], index: 8, kind: input, shape index: {}]   ;;  %s1972_s9 = inlined_call_operand.vmem [shape: f32[1,32], index: 9, kind: input, shape index: {}]   ;;  %s1973_s10 = inlined_call_operand.vmem [shape: f32[1,32], index: 10, kind: input, shape index: {}]   ;;  %s1974_s11 = inlined_call_operand.vmem [shape: bf16[32,128], index: 11, kind: input, shape index: {}]   ;;  %s1975_s12 = inlined_call_operand.vmem [shape: f32[1,128], index: 12, kind: input, shape index: {}]   ;;  %s1976_s13 = inlined_call_operand.vmem [shape: bf16[128,32], index: 13, kind: input, shape index: {}]   ;;  %s1977_s14 = inlined_call_operand.vmem [shape: f32[1,32], index: 14, kind: input, shape index: {}]   ;;  %s1978_s15 = inlined_call_operand.hbm [shape: f32[2,8,32], index: 15, kind: output, shape index: {}]  }
   0x1   :  { %1984 = sst [smem:[#allocation13_spill]] %s1963_s0 }
   0x2   :  { %1985 = sst [smem:[#allocation14_spill]] %s1964_s1 }
   0x3   :  { %1986 = sst [smem:[#allocation15_spill]] %s1965_s2 }
   0x4   :  { %1987 = sst [smem:[#allocation16_spill]] %s1966_s3 }
   0x5   :  { %1988 = sst [smem:[#allocation17_spill]] %s1967_s4 }
   0x6   :  { %1989 = sst [smem:[#allocation18_spill]] %s1978_s15 }
   0x7   :  { %20 = vsyncpa [#allocation5], 0 }
   0x8   :  { %21 = vsyncpa [#allocation6], 0 }
   0x9   :  { %23 = vsyncpa [#allocation6 + $0x1], 0  ;;  %s1716_s18 = smov 0   ;;  %s1718_s19 = smov 0  }
   0xa   :  { %s1720_s20 = smov 0   ;;  %s1722_s21 = smov 0  }
   0xb   :  { %s1724_s22 = smov 0   ;;  %s1726_s23 = smov 0  }
   0xc LB: > { %1990 = sst [smem:[#allocation10_spill]] %s1602_s18  ;;  %s1290_s24 = sadd.s32 4294967295, %s1622_s23   ;;  %s1622_s23 = sphi %s1726_s23, %s29_s23   ;;  %s1618_s22 = sphi %s1724_s22, %s2008_s22   ;;  %s1614_s21 = sphi %s1722_s21, %s2007_s21   ;;  %s1610_s20 = sphi %s1720_s20, %s2006_s20   ;;  %s1606_s19 = sphi %s1718_s19, %s2005_s19   ;;  %s1602_s18 = sphi %s1716_s18, %s2004_s18  }
   0xd   : > { %s1291_s25 = sadd.s32 4294967294, %s1622_s23   ;;  %s41_s26 = sadd.s32 1, %s1618_s22 }
   0xe   : > { %s370_s27 = sadd.s32 1, %s1610_s20  ;;  %p43_p0 = scmp.ge.s32.totalorder %s41_s26, 2 }
   0xf   : > { %p380_p1 = scmp.ne.s32.totalorder %s1610_s20, %s1606_s19  ;;  %p381_p2 = scmp.eq.s32.totalorder %s1290_s24, 1 }
  0x10   : > { %p386_p3 = scmp.ne.s32.totalorder %s1606_s19, %s1602_s18  ;;  %s2010_s26 = smov (%p43_p0, %s41_s26), 0 }
  0x11   : > { %1991 = sst [smem:[#allocation11_spill]] %s2010_s26  ;;  %p1756_p4 = por %p381_p2, %p380_p1 }
  0x12   : > { %p387_p5 = scmp.eq.s32.totalorder %s1291_s25, 1  ;;  %s365_s29 = ssub.s32 %s1618_s22, %s2010_s26 }
  0x13   : > { %s1992_s28 = scalar_select %p1756_p4, 1, 0 }
  0x14   : > { %p1292_p6 = scmp.ge.s32.totalorder %s1622_s23, 1  ;;  %p368_p7 = scmp.eq.s32.totalorder %s365_s29, 0 }
  0x15   : > { %1993 = sst [smem:[#allocation12_spill]] %s1992_s28  ;;  %p1763_p8 = por %p387_p5, %p386_p3 }
  0x16   : > { %p394_p9 = scmp.lt.s32.totalorder %s1622_s23, 3  ;;  %p1410_p11 = scmp.eq.s32.totalorder %s1290_s24, 0 }
  0x17   : > { %s1769_s16 = scalar_select %p368_p7, %s1610_s20, %s370_s27  }
  0x18   : > { %p395_p10 = pnand %p1292_p6, %p394_p9  ;;  %s1995_s1 = sld [smem:[#allocation14_spill]] }
  0x19   : > { %s1624_s28 = smov [#allocation4]  }
  0x1a   : > { %p1402_p12 = pneg %p395_p10  ;;  %s408_s25 = sshll.u32 %s1624_s28, 4  ;;  %s409_s25 = int_to_ptr.vmem [resolvable:$true] %s408_s25 }
  0x1b   : > { %467 = sbr.rel (%p395_p10) target bundleno = 1923 (0x783), region = 80 }
  0x1c   : > { %p1403_p13 = pnand %p1410_p11, %p1402_p12 }
  0x1e   : > { %s406_s15 = sshll.u32 %s1995_s1, 4  ;;  %s407_s15 = int_to_ptr.hbm [resolvable:$true] %s406_s15 }
  0x1f   : > { %1405 = dma.hbm_to_vmem [thread:$0]  (!%p1403_p13), %s407_s15, 16, %s409_s25, [#allocation5]  }
  0x20   : > { %1593 = dma.done.wait (%p1410_p11), [#allocation5], 16  }
  0x21   : > { %1595 = vsyncadd (%p1410_p11), [#allocation5], 4294967280  ;;  %p515_p0 = scmp.lt.s32.totalorder %s1614_s21, 1  ;;  %s1996_s0 = sld [smem:[#allocation13_spill]]  ;;  %vm527_vm0 = vcmask 261120   ;;  %v1625_v2 = vmov 32.0  }
  0x22   : > { %1484 = vrcp.f32 %v1625_v2  ;;  %v1381_v19 = vld [vmem:[%s1968_s5 + $0x8] sm:$0xff]  ;;  %v1380_v20 = vld [vmem:[%s1968_s5] sm:$0xff]  ;;  %s1997_s3 = sld [smem:[#allocation16_spill]]  ;;  %vm603_vm8 = vcmask 60416   ;;  %vm733_vm9 = vcmask 64512   ;;  %s1628_s24 = smov 112  }
  0x23   : > { %s516_s27 = scalar_select %p515_p0, %s1614_s21, 1  ;;  %595 = vmatpush.bf16.msra.mxu1 %v1381_v19  ;;  %v1473_v37 = vld [vmem:[#allocation4] ss:$0 sm:$0xff]  ;;  %vm865_vm10 = vcmask 1043456   ;;  %vm952_vm11 = vcmask 130048   ;;  %vm954_vm12 = vcmask 195584  }
  0x24   : > { %s1998_s2 = sld [smem:[#allocation15_spill]]  ;;  %v1475_v50 = vld [vmem:[#allocation4] ss:$0 sm:$0xff]  ;;  %s1629_s26 = smov 88  }
  0x25   : > { %s1298_s29 = sshll.u32 %s516_s27, 3  ;;  %v1477_v55 = vld [vmem:[%s1969_s6] ss:$0 sm:$0xff]  ;;  %s1626_s27 = smov 104  }
  0x26   : > { %s1999_s4 = sld [smem:[#allocation17_spill]]  ;;  %s1630_s28 = smov 80  }
  0x27   : > { %s518_s18 = scalar_lea.vmem %s1996_s0, %s1298_s29  ;;  %596 = vmatpush.bf16.msra.mxu1 %v1380_v20  ;;  %s1627_s29 = smov 120  }
  0x28   : > { %v1779_v0 = vld [vmem:[%s518_s18] sm:$0xff]  ;;  %v1485_v3 = vpop.eup %1484  ;;  %v1383_v21 = vld [vmem:[%s1997_s3 + $0x8] sm:$0xff]  ;;  %s1631_s17 = smov 96   ;;  %s1632_s25 = smov 72  }
  0x29   : > { %v528_v1 = vsel %vm527_vm0, %v1779_v0, 0.0  ;;  %v532_v4 = vmul.f32 32.0, %v1485_v3  ;;  %vm536_vm1 = vweird.f32 %v1485_v3  ;;  %v1382_v24 = vld [vmem:[%s1997_s3] sm:$0xff] }
  0x2a   : > { %529 = vadd.xlane.f32.xlu0 %v528_v1  ;;  %v1474_v41 = vld [vmem:[%s1998_s2] ss:$0 sm:$0xff] }
  0x2b   : > { %v533_v5 = vsub.f32 1.0, %v532_v4  ;;  %713 = vmatpush.bf16.msrb.mxu1 %v1383_v21  ;;  %v1476_v52 = vld [vmem:[%s1998_s2] ss:$0 sm:$0xff] }
  0x2c   : > { %v1478_v62 = vld [vmem:[%s1999_s4] ss:$0 sm:$0xff] }
  0x2d   : > { %v534_v6 = vmul.f32 %v1485_v3, %v533_v5 }
  0x2f   : > { %v535_v7 = vadd.f32 %v1485_v3, %v534_v6  ;;  %714 = vmatpush.bf16.msrb.mxu1 %v1382_v24 }
  0x31   : > { %v1783_v8 = vsel %vm536_vm1, %v1485_v3, %v535_v7 }
  0x32   : > { %647 = vadd.xlane.f32.xlu0 %v528_v1 }
  0x9d   : > { %v530_v9 = vpop.xlane.xlu0 %529 }
  0x9e   : > { %v538_v10 = vmul.f32 %v1783_v8, %v530_v9 }
  0xa0   : > { %v539_v11 = vsub.f32 %v1779_v0, %v538_v10 }
  0xa2   : > { %v540_v12 = vmul.f32 %v539_v11, %v539_v11 }
  0xa4   : > { %v541_v13 = vsel %vm527_vm0, %v540_v12, 0.0 }
  0xa5   : > { %542 = vadd.xlane.f32.xlu1 %v541_v13  ;;  %v648_v14 = vpop.xlane.xlu0 %647 }
  0xa6   : > { %v656_v15 = vmul.f32 %v648_v14, %v1783_v8 }
  0xa8   : > { %v657_v16 = vsub.f32 %v1779_v0, %v656_v15 }
  0xaa   : > { %v658_v17 = vmul.f32 %v657_v16, %v657_v16 }
  0xac   : > { %v659_v18 = vsel %vm527_vm0, %v658_v17, 0.0 }
  0xad   : > { %660 = vadd.xlane.f32.xlu1 %v659_v18 }
 0x118   : > { %v543_v22 = vpop.xlane.xlu1 %542 }
 0x119   : > { %v544_v23 = vmul.f32 %v543_v22, %v1783_v8 }
 0x11b   : > { %v545_v25 = vadd.f32 1e-05, %v544_v23 }
 0x11d   : > { %1486 = vrsqrt.f32 %v545_v25  ;;  %vm552_vm3 = vweird.f32 %v545_v25 }
 0x120   : > { %v661_v26 = vpop.xlane.xlu1 %660 }
 0x121   : > { %v662_v27 = vmul.f32 %v661_v26, %v1783_v8 }
 0x123   : > { %v1487_v28 = vpop.eup %1486  ;;  %v663_v29 = vadd.f32 1e-05, %v662_v27 }
 0x124   : > { %v547_v30 = vmul.f32 %v1487_v28, %v545_v25  ;;  %vm553_vm2 = vweird.f32 %v1487_v28 }
 0x125   : > { %1488 = vrsqrt.f32 %v663_v29  ;;  %vm554_vm4 = vmor %vm552_vm3, %vm553_vm2  ;;  %vm670_vm5 = vweird.f32 %v663_v29 }
 0x126   : > { %v548_v31 = vmul.f32 %v1487_v28, %v547_v30 }
 0x128   : > { %v549_v32 = vmul.f32 0.5, %v548_v31 }
 0x12a   : > { %v550_v33 = vsub.f32 1.5, %v549_v32 }
 0x12b   : > { %v1489_v34 = vpop.eup %1488 }
 0x12c   : > { %v551_v35 = vmul.f32 %v1487_v28, %v550_v33  ;;  %v665_v36 = vmul.f32 %v1489_v34, %v663_v29  ;;  %vm671_vm6 = vweird.f32 %v1489_v34 }
 0x12d   : > { %vm672_vm7 = vmor %vm670_vm5, %vm671_vm6 }
 0x12e   : > { %v555_v38 = vsel %vm554_vm4, %v1487_v28, %v551_v35  ;;  %v666_v39 = vmul.f32 %v1489_v34, %v665_v36 }
 0x12f   : > { %v556_v40 = vmul.f32 %v555_v38, %v539_v11 }
 0x130   : > { %v667_v42 = vmul.f32 0.5, %v666_v39 }
 0x131   : > { %v560_v43 = vmul.f32 %v1473_v37, %v556_v40 }
 0x132   : > { %v668_v44 = vsub.f32 1.5, %v667_v42 }
 0x133   : > { %v564_v45 = vadd.f32 %v1474_v41, %v560_v43 }
 0x134   : > { %v669_v46 = vmul.f32 %v1489_v34, %v668_v44 }
 0x135   : > { %v565_v47 = vpack.c.bf16 %v564_v45, %v564_v45 }
 0x136   : > { %v673_v48 = vsel %vm672_vm7, %v1489_v34, %v669_v46 }
 0x137   : > { %1307 = vmatmul.msk.bf16.vlgmr.msra.gmra.mxu1 %vm527_vm0, %v565_v47  ;;  %v674_v49 = vmul.f32 %v673_v48, %v657_v16 }
 0x139   : > { %v678_v51 = vmul.f32 %v1475_v50, %v674_v49 }
 0x13b   : > { %v682_v53 = vadd.f32 %v1476_v52, %v678_v51 }
 0x13d   : > { %v683_v54 = vpack.c.bf16 %v682_v53, %v682_v53 }
 0x147   : > { %1316 = vmatmul.msk.bf16.vlgmr.msrb.gmra.mxu1 %vm527_vm0, %v683_v54 }
 0x1b4   : > { %v598_v56 = vpop.f32.mrf.mxu1 }
 0x1b5   : > { %v599_v57 = vadd.f32 %v1477_v55, %v598_v56 }
 0x1b7   : > { %v1816_v58 = vpack.c.bf16 %v599_v57, %v599_v57 }
 0x1b9   : > { %630 = vrot.lane.b32.xlu0 %v1816_v58, %s1626_s27  ;;  %610 = vrot.lane.b32.xlu2 %v1816_v58, %s1627_s29  ;;  %604 = vst.msk [vmem:[#allocation2] sm:$0xf] %vm603_vm8, %v1816_v58 }
 0x1bc   : > { %v600_v59 = vpop.f32.mrf.mxu1 }
 0x1c0   : > { %v729_v60 = vld [vmem:[#allocation2] sm:$0xf] }
 0x1c1   : > { %620 = vrot.lane.b32.xlu2 %v1816_v58, %s1628_s24  ;;  %v738_v61 = vsel %vm733_vm9, %v729_v60, 0 }
 0x1c2   : > { %747 = vmatpush.bf16.xpose.msra.mxu2 %v738_v61 }
 0x1c4   : > { %v716_v63 = vpop.f32.mrf.mxu1 }
 0x1c5   : > { %v717_v1 = vadd.f32 %v1478_v62, %v716_v63 }
 0x1c7   : > { %v720_v2 = vmul.f32 0.35355338, %v717_v1 }
 0x1c9   : > { %v721_v3 = vpack.c.bf16 %v720_v2, %v720_v2 }
 0x1cb   : > { %725 = vrot.lane.b32.xlu2 %v721_v3, %s1628_s24  ;;  %723 = vrot.lane.b32.xlu1 %v721_v3, %s1627_s29  ;;  %s1634_s29 = smov 8   ;;  %s1635_s24 = smov 24  }
 0x1cc   : > { %1317 = vmatmul.msk.bf16.vlgmr.msra.gmra.mxu2 %vm733_vm9, %v721_v3  ;;  %v718_v4 = vpop.f32.mrf.mxu1 }
 0x1d3   : > { %727 = vrot.lane.b32.xlu2 %v721_v3, %s1626_s27  ;;  %s1633_s27 = smov 16  }
 0x213   : > { %v611_v5 = vpop.permute.xlu2 %610 }
 0x214   : > { %614 = vst.msk [vmem:[#allocation2 + $0x4] sm:$0xf] %vm603_vm8, %v611_v5 }
 0x21b   : > { %v621_v6 = vpop.permute.xlu2 %620  ;;  %v730_v7 = vld [vmem:[#allocation2 + $0x4] sm:$0xf] }
 0x21c   : > { %624 = vst.msk [vmem:[#allocation2 + $0x8] sm:$0xf] %vm603_vm8, %v621_v6  ;;  %v757_v9 = vsel %vm733_vm9, %v730_v7, 0 }
 0x21d   : > { %766 = vmatpush.bf16.xpose.msra.mxu3 %v757_v9 }
 0x223   : > { %v731_v10 = vld [vmem:[#allocation2 + $0x8] sm:$0xf] }
 0x224   : > { %v776_v11 = vsel %vm733_vm9, %v731_v10, 0 }
 0x225   : > { %785 = vmatpush.bf16.xpose.msra.mxu0 %v776_v11  ;;  %v726_v12 = vpop.permute.xlu2 %725 }
 0x22b   : > { %v631_v13 = vpop.permute.xlu0 %630 }
 0x22c   : > { %634 = vst.msk [vmem:[#allocation2 + $0xc] sm:$0xf] %vm603_vm8, %v631_v13  ;;  %1319 = vmatmul.msk.bf16.vlgmr.msra.gmra.mxu0 %vm733_vm9, %v726_v12 }
 0x22d   : > { %v728_v16 = vpop.permute.xlu2 %727 }
 0x233   : > { %v732_v14 = vld [vmem:[#allocation2 + $0xc] sm:$0xf] }
 0x234   : > { %v795_v15 = vsel %vm733_vm9, %v732_v14, 0 }
 0x235   : > { %804 = vmatpush.bf16.xpose.msra.mxu1 %v795_v15 }
 0x23c   : > { %1320 = vmatmul.msk.bf16.vlgmr.msra.gmra.mxu1 %vm733_vm9, %v728_v16 }
 0x23d   : > { %v724_v17 = vpop.permute.xlu1 %723 }
 0x23e   : > { %1318 = vmatmul.msk.bf16.vlgmr.msra.gmra.mxu3 %vm733_vm9, %v724_v17 }
 0x24f   : > { %v749_v18 = vpop.f32.mrf.mxu2 }
 0x250   : > { %v810_v29 = vsel %vm733_vm9, %v749_v18, -inf }
 0x257   : > { %v751_v19 = vpop.f32.mrf.mxu2 }
 0x2a9   : > { %v787_v20 = vpop.f32.mrf.mxu0 }
 0x2aa   : > { %v816_v21 = vsel %vm733_vm9, %v787_v20, -inf }
 0x2ab   : > { %817 = vmax.xlane.f32.xlu0 %v816_v21 }
 0x2b1   : > { %v789_v22 = vpop.f32.mrf.mxu0 }
 0x2b9   : > { %v806_v23 = vpop.f32.mrf.mxu1 }
 0x2ba   : > { %v819_v24 = vsel %vm733_vm9, %v806_v23, -inf }
 0x2bb   : > { %820 = vmax.xlane.f32.xlu1 %v819_v24  ;;  %v1385_v24 = vld [vmem:[%s1970_s7 + $0x8] sm:$0xff] }
 0x2bf   : > { %615 = vrot.lane.b32.xlu0 %v1816_v58, %s1629_s26 }
 0x2c1   : > { %v768_v25 = vpop.f32.mrf.mxu3  ;;  %v808_v26 = vpop.f32.mrf.mxu1 }
 0x2c2   : > { %v813_v27 = vsel %vm733_vm9, %v768_v25, -inf }
 0x2c3   : > { %814 = vmax.xlane.f32.xlu2 %v813_v27 }
 0x2c9   : > { %v770_v28 = vpop.f32.mrf.mxu3 }
 0x2cb   : > { %811 = vmax.xlane.f32.xlu2 %v810_v29 }
 0x2d4   : > { %625 = vrot.lane.b32.xlu1 %v1816_v58, %s1630_s28  ;;  %s2000_s28 = sld [smem:[#allocation18_spill]] }
 0x2dc   : > { %606 = vrot.lane.b32.xlu1 %v1816_v58, %s1631_s17 }
 0x31e   : > { %v818_v30 = vpop.xlane.xlu0 %817 }
 0x31f   : > { %v824_v31 = vsub.f32 %v787_v20, %v818_v30 }
 0x321   : > { %v830_v32 = vmul.f32 1.442695, %v824_v31 }
 0x323   : > { %1490 = vpow2.f32 %v830_v32 }
 0x329   : > { %v1491_v33 = vpop.eup %1490 }
 0x32a   : > { %v840_v34 = vsel %vm733_vm9, %v1491_v33, 0.0 }
 0x32b   : > { %841 = vadd.xlane.f32.xlu2 %v840_v34 }
 0x32e   : > { %v821_v35 = vpop.xlane.xlu1 %820 }
 0x32f   : > { %v825_v36 = vsub.f32 %v806_v23, %v821_v35 }
 0x331   : > { %v832_v37 = vmul.f32 1.442695, %v825_v36  ;;  %v616_v38 = vpop.permute.xlu0 %615 }
 0x332   : > { %619 = vst.msk [vmem:[#allocation3 + $0x4] sm:$0xf] %vm603_vm8, %v616_v38 }
 0x333   : > { %1492 = vpow2.f32 %v832_v37 }
 0x336   : > { %v815_v39 = vpop.xlane.xlu2 %814 }
 0x337   : > { %v823_v40 = vsub.f32 %v768_v25, %v815_v39  ;;  %v1384_v25 = vld [vmem:[%s1970_s7] sm:$0xff] }
 0x339   : > { %v1493_v41 = vpop.eup %1492  ;;  %v828_v42 = vmul.f32 1.442695, %v823_v40  ;;  %v859_v43 = vld [vmem:[#allocation3 + $0x4] sm:$0xf] }
 0x33a   : > { %v843_v44 = vsel %vm733_vm9, %v1493_v41, 0.0  ;;  %v886_v45 = vsel %vm865_vm10, %v859_v43, 0 }
 0x33b   : > { %1494 = vpow2.f32 %v828_v42  ;;  %844 = vadd.xlane.f32.xlu0 %v843_v44  ;;  %895 = vmatpush.bf16.msrb.mxu3 %v886_v45  ;;  %v1387_v44 = vld [vmem:[%s1974_s11 + $0x8] sm:$0xff] }
 0x33e   : > { %v812_v46 = vpop.xlane.xlu2 %811 }
 0x33f   : > { %v822_v47 = vsub.f32 %v749_v18, %v812_v46  ;;  %1056 = vmatpush.bf16.msra.mxu3 %v1387_v44 }
 0x341   : > { %v1495_v48 = vpop.eup %1494  ;;  %v826_v49 = vmul.f32 1.442695, %v822_v47 }
 0x342   : > { %v837_v50 = vsel %vm733_vm9, %v1495_v48, 0.0 }
 0x343   : > { %1496 = vpow2.f32 %v826_v49  ;;  %838 = vadd.xlane.f32.xlu2 %v837_v50 }
 0x346   : > { %v626_v51 = vpop.permute.xlu1 %625 }
 0x347   : > { %629 = vst.msk [vmem:[#allocation3 + $0x8] sm:$0xf] %vm603_vm8, %v626_v51 }
 0x349   : > { %v1497_v52 = vpop.eup %1496 }
 0x34a   : > { %v834_v53 = vsel %vm733_vm9, %v1497_v52, 0.0 }
 0x34b   : > { %835 = vadd.xlane.f32.xlu1 %v834_v53 }
 0x34e   : > { %v607_v54 = vpop.permute.xlu1 %606  ;;  %v860_v55 = vld [vmem:[#allocation3 + $0x8] sm:$0xf] }
 0x34f   : > { %609 = vst.msk [vmem:[#allocation3] sm:$0xf] %vm603_vm8, %v607_v54  ;;  %v905_v56 = vsel %vm865_vm10, %v860_v55, 0  ;;  %v1480_v54 = vld [vmem:[%s1972_s9] ss:$0 sm:$0xff] }
 0x350   : > { %914 = vmatpush.bf16.msrb.mxu0 %v905_v56 }
 0x356   : > { %v858_v57 = vld [vmem:[#allocation3] sm:$0xf] }
 0x357   : > { %v867_v59 = vsel %vm865_vm10, %v858_v57, 0 }
 0x358   : > { %876 = vmatpush.bf16.msrb.mxu2 %v867_v59 }
 0x35b   : > { %635 = vrot.lane.b32.xlu2 %v1816_v58, %s1632_s25  ;;  %s512_s25 = sand.u32 1, %s1606_s19  }
 0x35c   : > { %986 = vmatpush.bf16.msra.mxu2 %v1385_v24 }
 0x360   : > { %987 = vmatpush.bf16.msra.mxu2 %v1384_v25 }
 0x39e   : > { %v842_v60 = vpop.xlane.xlu2 %841 }
 0x39f   : > { %1498 = vrcp.f32 %v842_v60 }
 0x3a5   : > { %v1499_v61 = vpop.eup %1498 }
 0x3a6   : > { %v852_v62 = vmul.f32 %v1499_v61, %v1491_v33  ;;  %v1479_v33 = vld [vmem:[%s1971_s8] ss:$0 sm:$0xff]  ;;  %v1395_v61 = vld [vmem:[%s1976_s13 + $0x38] sm:$0xff] }
 0x3a7   : > { %1176 = vmatpush.bf16.msra.mxu0 %v1395_v61 }
 0x3a8   : > { %v856_v63 = vpack.c.bf16 %v852_v62, %v852_v62  ;;  %v1394_v62 = vld [vmem:[%s1976_s13 + $0x30] sm:$0xff] }
 0x3aa   : > { %1323 = vmatmul.msk.bf16.vlgmr.msrb.gmra.mxu0 %vm733_vm9, %v856_v63  ;;  %v1482_v63 = vld [vmem:[%s1975_s12] ss:$0 sm:$0xff] }
 0x3ab   : > { %1177 = vmatpush.bf16.msra.mxu0 %v1394_v62 }
 0x3ae   : > { %v845_v2 = vpop.xlane.xlu0 %844 }
 0x3b6   : > { %v839_v1 = vpop.xlane.xlu2 %838 }
 0x3b7   : > { %1500 = vrcp.f32 %v839_v1 }
 0x3b8   : > { %1502 = vrcp.f32 %v845_v2  ;;  %v1393_v2 = vld [vmem:[%s1976_s13 + $0x28] sm:$0xff] }
 0x3b9   : > { %1178 = vmatpush.bf16.msra.mxu0 %v1393_v2 }
 0x3bd   : > { %v1501_v3 = vpop.eup %1500 }
 0x3be   : > { %v851_v4 = vmul.f32 %v1501_v3, %v1495_v48  ;;  %v836_v5 = vpop.xlane.xlu1 %835  ;;  %v636_v6 = vpop.permute.xlu2 %635 }
 0x3bf   : > { %1504 = vrcp.f32 %v836_v5  ;;  %639 = vst.msk [vmem:[#allocation3 + $0xc] sm:$0xf] %vm603_vm8, %v636_v6  ;;  %v1503_v58 = vpop.eup %1502  ;;  %v1392_v5 = vld [vmem:[%s1976_s13 + $0x20] sm:$0xff] }
 0x3c0   : > { %v855_v7 = vpack.c.bf16 %v851_v4, %v851_v4  ;;  %v853_v10 = vmul.f32 %v1503_v58, %v1493_v41  ;;  %1179 = vmatpush.bf16.msra.mxu0 %v1392_v5 }
 0x3c2   : > { %1322 = vmatmul.msk.bf16.vlgmr.msrb.gmra.mxu3 %vm733_vm9, %v855_v7  ;;  %v857_v15 = vpack.c.bf16 %v853_v10, %v853_v10 }
 0x3c5   : > { %v1505_v9 = vpop.eup %1504 }
 0x3c6   : > { %v850_v11 = vmul.f32 %v1505_v9, %v1497_v52  ;;  %v861_v12 = vld [vmem:[#allocation3 + $0xc] sm:$0xf] }
 0x3c7   : > { %v924_v13 = vsel %vm865_vm10, %v861_v12, 0  ;;  %v1391_v9 = vld [vmem:[%s1976_s13 + $0x18] sm:$0xff] }
 0x3c8   : > { %v854_v14 = vpack.c.bf16 %v850_v11, %v850_v11  ;;  %933 = vmatpush.bf16.msrb.mxu1 %v924_v13  ;;  %1180 = vmatpush.bf16.msra.mxu0 %v1391_v9 }
 0x3ca   : > { %1321 = vmatmul.msk.bf16.vlgmr.msrb.gmra.mxu2 %vm733_vm9, %v854_v14  ;;  %v1390_v14 = vld [vmem:[%s1976_s13 + $0x10] sm:$0xff] }
 0x3cb   : > { %1324 = vmatmul.msk.bf16.vlgmr.msrb.gmra.mxu1 %vm733_vm9, %v857_v15 }
 0x3cc   : > { %1181 = vmatpush.bf16.msra.mxu0 %v1390_v14 }
 0x427   : > { %v916_v16 = vpop.f32.mrf.mxu0 }
 0x428   : > { %944 = vrot.lane.b32.xlu2 %v916_v16, %s1633_s27  ;;  %s1297_s27 = sshll.u32 %s512_s25, 3 }
 0x429   : > { %s514_s1 = scalar_lea.vmem [#allocation7], %s1297_s27  ;;  %s1560_s27 = scalar_lea.hbm %s2000_s28, 16 }
 0x42a   : > { %s1205_s2 = sshll.u32 %s514_s1, 4  ;;  %s1206_s2 = int_to_ptr.vmem [resolvable:$true] %s1205_s2 }
 0x42f   : > { %v918_v17 = vpop.f32.mrf.mxu0 }
 0x445   : > { %v897_v18 = vpop.f32.mrf.mxu3 }
 0x446   : > { %940 = vrot.lane.b32.xlu2 %v897_v18, %s1634_s29  ;;  %s1377_s29 = sshll.u32 %s1614_s21, 3  ;;  %s1192_s21 = scalar_lea.sflag [#allocation6], %s512_s25 }
 0x447   : > { %s1203_s0 = scalar_lea.hbm %s2000_s28, %s1377_s29 }
 0x448   : > { %v935_v19 = vpop.f32.mrf.mxu1  ;;  %s1207_s3 = sshll.u32 %s1203_s0, 4  ;;  %s1208_s3 = int_to_ptr.hbm [resolvable:$true] %s1207_s3 }
 0x449   : > { %s1554_s4 = sshra.s32 %s1208_s3, 4  ;;  %s1555_s4 = int_to_ptr.hbm [resolvable:$true] %s1554_s4 }
 0x44a   : > { %p1561_p5 = scmp.lt.s32.totalorder %s1555_s4, %s2000_s28 }
 0x44d   : > { %v878_v20 = vpop.f32.mrf.mxu2  ;;  %v899_v21 = vpop.f32.mrf.mxu3 }
 0x44e   : > { %948 = vrot.lane.b32.xlu2 %v935_v19, %s1635_s24  ;;  %v1389_v19 = vld [vmem:[%s1976_s13 + $0x8] sm:$0xff]  ;;  %s1556_s24 = scalar_lea.hbm %s1555_s4, 8 }
 0x44f   : > { %1182 = vmatpush.bf16.msra.mxu0 %v1389_v19  ;;  %p1557_p1 = scmp.ne.s32.totalorder %s1555_s4, %s1556_s24  ;;  %p1562_p6 = scmp.lt.s32.totalorder %s1560_s27, %s1556_s24 }
 0x450   : > { %v937_v22 = vpop.f32.mrf.mxu1 }
 0x451   : > { %p1558_p2 = pnand %p1557_p1, %p1756_p4  ;;  %p1563_p7 = por %p1562_p6, %p1561_p5 }
 0x453   : > { %p1559_p3 = pneg %p1558_p2 }
 0x455   : > { %v880_v23 = vpop.f32.mrf.mxu2  ;;  %p1564_p9 = pnand %p1563_p7, %p1559_p3 }
 0x456   : > { %v1388_v23 = vld [vmem:[%s1976_s13] sm:$0xff] }
 0x457   : > { %1183 = vmatpush.bf16.msra.mxu0 %v1388_v23 }
 0x482   : > { %v945_v26 = vpop.permute.xlu2 %944 }
 0x4a0   : > { %v941_v27 = vpop.permute.xlu2 %940 }
 0x4a1   : > { %v951_v28 = vsel %vm733_vm9, %v878_v20, %v941_v27 }
 0x4a2   : > { %v953_v29 = vsel %vm952_vm11, %v951_v28, %v945_v26 }
 0x4a8   : > { %v949_v30 = vpop.permute.xlu2 %948 }
 0x4a9   : > { %v955_v31 = vsel %vm954_vm12, %v953_v29, %v949_v30 }
 0x4aa   : > { %v956_v32 = vpack.c.bf16 %v955_v31, %v955_v31 }
 0x4ac   : > { %1333 = vmatmul.msk.bf16.vlgmr.msra.gmra.mxu2 %vm527_vm0, %v956_v32 }
 0x52f   : > { %v989_v34 = vpop.f32.mrf.mxu2 }
 0x530   : > { %v990_v35 = vadd.f32 %v1479_v33, %v989_v34 }
 0x532   : > { %v1873_v36 = vadd.f32 %v990_v35, %v1779_v0  ;;  %v1386_v0 = vld [vmem:[%s1974_s11] sm:$0xff] }
 0x533   : > { %1057 = vmatpush.bf16.msra.mxu3 %v1386_v0 }
 0x534   : > { %v996_v37 = vsel %vm527_vm0, %v1873_v36, 0.0 }
 0x535   : > { %997 = vadd.xlane.f32.xlu0 %v996_v37 }
 0x537   : > { %v991_v38 = vpop.f32.mrf.mxu2 }
 0x5a8   : > { %v998_v39 = vpop.xlane.xlu0 %997 }
 0x5a9   : > { %v999_v40 = vmul.f32 %v998_v39, %v1783_v8 }
 0x5ab   : > { %v1000_v41 = vsub.f32 %v1873_v36, %v999_v40 }
 0x5ad   : > { %v1001_v42 = vmul.f32 %v1000_v41, %v1000_v41 }
 0x5af   : > { %v1002_v43 = vsel %vm527_vm0, %v1001_v42, 0.0 }
 0x5b0   : > { %1003 = vadd.xlane.f32.xlu2 %v1002_v43 }
 0x623   : > { %v1004_v45 = vpop.xlane.xlu2 %1003 }
 0x624   : > { %v1005_v46 = vmul.f32 %v1004_v45, %v1783_v8  ;;  %v1481_v8 = vld [vmem:[%s1973_s10] ss:$0 sm:$0xff] }
 0x626   : > { %v1006_v47 = vadd.f32 1e-05, %v1005_v46 }
 0x628   : > { %1506 = vrsqrt.f32 %v1006_v47  ;;  %vm1013_vm14 = vweird.f32 %v1006_v47 }
 0x62e   : > { %v1507_v48 = vpop.eup %1506 }
 0x62f   : > { %v1008_v49 = vmul.f32 %v1507_v48, %v1006_v47  ;;  %vm1014_vm13 = vweird.f32 %v1507_v48 }
 0x630   : > { %vm1015_vm15 = vmor %vm1013_vm14, %vm1014_vm13 }
 0x631   : > { %v1009_v50 = vmul.f32 %v1507_v48, %v1008_v49 }
 0x633   : > { %v1010_v51 = vmul.f32 0.5, %v1009_v50  ;;  %v1483_v50 = vld [vmem:[%s1977_s14] ss:$0 sm:$0xff] }
 0x635   : > { %v1011_v52 = vsub.f32 1.5, %v1010_v51 }
 0x637   : > { %v1012_v53 = vmul.f32 %v1507_v48, %v1011_v52 }
 0x639   : > { %v1016_v55 = vsel %vm1015_vm15, %v1507_v48, %v1012_v53 }
 0x63a   : > { %v1017_v56 = vmul.f32 %v1016_v55, %v1000_v41 }
 0x63c   : > { %v1021_v57 = vmul.f32 %v1480_v54, %v1017_v56 }
 0x63e   : > { %v1025_v59 = vadd.f32 %v1481_v8, %v1021_v57 }
 0x640   : > { %v1026_v60 = vpack.c.bf16 %v1025_v59, %v1025_v59 }
 0x642   : > { %1342 = vmatmul.msk.bf16.vlgmr.msra.gmra.mxu3 %vm527_vm0, %v1026_v60 }
 0x6c5   : > { %v1059_v1 = vpop.f32.mrf.mxu3 }
 0x6c6   : > { %v1060_v3 = vadd.f32 %v1482_v63, %v1059_v1 }
 0x6c8   : > { %v1064_v4 = vmul.f32 0.70710677, %v1060_v3  ;;  %v1063_v46 = vmul.f32 0.5, %v1060_v3 }
 0x6ca   : > { %v1065_v6 = vmul.f32 %v1064_v4, %v1064_v4 }
 0x6cc   : > { %v1066_v7 = vmin.f32 %v1065_v6, 16.0 }
 0x6cd   : > { %v1061_v58 = vpop.f32.mrf.mxu3 }
 0x6ce   : > { %v1067_v10 = vmul.f32 2.1237322e-06, %v1066_v7  ;;  %v1078_v11 = vmul.f32 3.8918573e-05, %v1066_v7 }
 0x6d0   : > { %v1068_v12 = vadd.f32 0.00028619796, %v1067_v10  ;;  %v1079_v13 = vadd.f32 0.001143296, %v1078_v11 }
 0x6d2   : > { %v1069_v15 = vmul.f32 %v1068_v12, %v1066_v7  ;;  %v1080_v16 = vmul.f32 %v1079_v13, %v1066_v7 }
 0x6d4   : > { %v1081_v17 = vadd.f32 0.014752088, %v1080_v16  ;;  %v1070_v18 = vadd.f32 0.0036580483, %v1069_v15 }
 0x6d6   : > { %v1082_v20 = vmul.f32 %v1081_v17, %v1066_v7  ;;  %v1071_v22 = vmul.f32 %v1070_v18, %v1066_v7 }
 0x6d8   : > { %v1083_v21 = vadd.f32 0.112945676, %v1082_v20  ;;  %v1072_v26 = vadd.f32 0.05243302, %v1071_v22 }
 0x6da   : > { %v1084_v24 = vmul.f32 %v1083_v21, %v1066_v7  ;;  %v1073_v29 = vmul.f32 %v1072_v26, %v1066_v7 }
 0x6dc   : > { %v1085_v25 = vadd.f32 0.4994258, %v1084_v24  ;;  %v1074_v30 = vadd.f32 0.18741608, %v1073_v29 }
 0x6de   : > { %v1086_v27 = vmul.f32 %v1085_v25, %v1066_v7  ;;  %v1075_v32 = vmul.f32 %v1074_v30, %v1066_v7 }
 0x6e0   : > { %v1087_v28 = vadd.f32 1.0, %v1086_v27  ;;  %v1076_v37 = vadd.f32 1.1283791, %v1075_v32 }
 0x6e2   : > { %1508 = vrcp.f32 %v1087_v28  ;;  %v1099_v35 = vand.u32 2147483648, %v1087_v28  ;;  %v1097_v39 = vand.u32 2147483647, %v1087_v28  ;;  %vm1093_vm2 = vweird.f32 %v1087_v28 }
 0x6e3   : > { %v1077_v42 = vmul.f32 %v1076_v37, %v1064_v4 }
 0x6e4   : > { %v1100_v41 = vor.u32 1.1754944e-38, %v1099_v35  ;;  %vm1098_vm4 = vcmp.eq.f32.partialorder %v1097_v39, 8.507059e+37 }
 0x6e8   : > { %v1509_v31 = vpop.eup %1508 }
 0x6e9   : > { %v1089_v33 = vmul.f32 %v1509_v31, %v1087_v28  ;;  %vm1094_vm1 = vweird.f32 %v1509_v31 }
 0x6ea   : > { %vm1095_vm3 = vmor %vm1093_vm2, %vm1094_vm1 }
 0x6eb   : > { %v1090_v34 = vsub.f32 1.0, %v1089_v33 }
 0x6ed   : > { %v1091_v38 = vmul.f32 %v1509_v31, %v1090_v34 }
 0x6ef   : > { %v1092_v40 = vadd.f32 %v1509_v31, %v1091_v38 }
 0x6f1   : > { %v1096_v43 = vsel %vm1095_vm3, %v1509_v31, %v1092_v40 }
 0x6f2   : > { %v1101_v44 = vsel %vm1098_vm4, %v1100_v41, %v1096_v43 }
 0x6f3   : > { %v1102_v0 = vmul.f32 %v1101_v44, %v1077_v42 }
 0x6f5   : > { %v1343_v45 = vclamps-f32 %v1102_v0, 1.0 }
 0x6f7   : > { %v1105_v47 = vadd.f32 1.0, %v1343_v45 }
 0x6f9   : > { %v1106_v48 = vmul.f32 %v1105_v47, %v1063_v46 }
 0x6fb   : > { %v1107_v49 = vpack.c.bf16 %v1106_v48, %v1106_v48 }
 0x6fd   : > { %1184 = vmatmul.bf16.vlgmr.msra.gmra.mxu0 %v1107_v49 }
 0x77a   : > { %v1185_v51 = vpop.f32.mrf.mxu0 }
 0x77b   : > { %v1186_v52 = vadd.f32 %v1483_v50, %v1185_v51 }
 0x77d   : > { %v1189_v53 = vadd.f32 %v1186_v52, %v1873_v36 }
 0x77f   : > { %1190 = vst.msk [vmem:[%s514_s1] sm:$0xff] %vm527_vm0, %v1189_v53 }
 0x780   : > { %1567 = shalt.err (!%p1564_p9)
}
 0x781   : > { %1400 = dma.vmem_to_hbm [thread:$0]  (%p1756_p4), %s1206_s2, 128, %s1208_s3, %s1192_s21  }
 0x782   : > { %v1187_v36 = vpop.f32.mrf.mxu0 }
 0x783 PF: > { %s2002_s1 = sld [smem:[#allocation10_spill]]  ;;  %p1412_p10 = scmp.ge.s32.totalorder %s1622_s23, 2 }
 0x785   : > { %p1407_p11 = pnand %p1412_p10, %p1763_p8 }
 0x787   : > { %p1408_p12 = pneg %p1407_p11 }
 0x789   : > { %s1219_s25 = sand.u32 1, %s2002_s1  }
 0x78a   : > { %s1220_s26 = scalar_lea.sflag [#allocation6], %s1219_s25 }
 0x78b   : > { %1597 = dma.done.wait (%p1408_p12), %s1220_s26, 128  }
 0x78c   : > { %1599 = vsyncadd (%p1408_p12), %s1220_s26, 4294967168  ;;  %s29_s23 = sadd.s32 1, %s1622_s23   ;;  %s2003_s2 = sld [smem:[#allocation11_spill]] }
 0x78d   : > { %p26_p13 = scmp.ge.s32.totalorder %s29_s23, 4   ;;  %s2004_s18 = smov %s1606_s19 }
 0x78e   : > { %s2005_s19 = smov %s1610_s20  ;;  %s2006_s20 = smov %s1769_s16 }
 0x78f   : > { %s2007_s21 = smov %s1618_s22  ;;  %28 = sbr.rel (!%p26_p13) target bundleno = 12 (0xc), region = 131 }
 0x792   : > { %s2008_s22 = smov %s2003_s2 }
 0x794   :  { %1226 = vsyncpa [#allocation5], 1 }
 0x795   :  { %1228 = vsyncpa [#allocation5 + $0x1], 1 }
 0x796   :  { %1229 = vsyncpa [#allocation6], 1 }
 0x797   :  { %1231 = vsyncpa [#allocation6 + $0x1], 1 }

// kernel: tpu_custom_call.1
= control target key start
LH: loop header
LB: loop body
LE: loop exit
PB: predicated region body
PF: predicated region fallthrough
CT: control target
= control target key end

     0   :  { %s1963_s0 = inlined_call_operand.vmem [shape: f32[2,8,32], index: 0, kind: input, shape index: {}]   ;;  %s1964_s1 = inlined_call_operand.hbm [shape: f32[1,32], index: 1, kind: input, shape index: {}]   ;;  %s1965_s2 = inlined_call_operand.vmem [shape: f32[1,32], index: 2, kind: input, shape index: {}]   ;;  %s1966_s3 = inlined_call_operand.vmem [shape: bf16[32,32], index: 3, kind: input, shape index: {}]   ;;  %s1967_s4 = inlined_call_operand.vmem [shape: f32[1,32], index: 4, kind: input, shape index: {}]   ;;  %s1968_s5 = inlined_call_operand.vmem [shape: bf16[32,64], index: 5, kind: input, shape index: {}]   ;;  %s1969_s6 = inlined_call_operand.vmem [shape: f32[1,64], index: 6, kind: input, shape index: {}]   ;;  %s1970_s7 = inlined_call_operand.vmem [shape: bf16[32,32], index: 7, kind: input, shape index: {}]   ;;  %s1971_s8 = inlined_call_operand.vmem [shape: f32[1,32], index: 8, kind: input, shape index: {}]   ;;  %s1972_s9 = inlined_call_operand.vmem [shape: f32[1,32], index: 9, kind: input, shape index: {}]   ;;  %s1973_s10 = inlined_call_operand.vmem [shape: f32[1,32], index: 10, kind: input, shape index: {}]   ;;  %s1974_s11 = inlined_call_operand.vmem [shape: bf16[32,128], index: 11, kind: input, shape index: {}]   ;;  %s1975_s12 = inlined_call_operand.vmem [shape: f32[1,128], index: 12, kind: input, shape index: {}]   ;;  %s1976_s13 = inlined_call_operand.vmem [shape: bf16[128,32], index: 13, kind: input, shape index: {}]   ;;  %s1977_s14 = inlined_call_operand.vmem [shape: f32[1,32], index: 14, kind: input, shape index: {}]   ;;  %s1978_s15 = inlined_call_operand.hbm [shape: f32[2,8,32], index: 15, kind: output, shape index: {}]  }
   0x1   :  { %1984 = sst [smem:[#allocation13_spill]] %s1963_s0 }
   0x2   :  { %1985 = sst [smem:[#allocation14_spill]] %s1964_s1 }
   0x3   :  { %1986 = sst [smem:[#allocation15_spill]] %s1965_s2 }
   0x4   :  { %1987 = sst [smem:[#allocation16_spill]] %s1966_s3 }
   0x5   :  { %1988 = sst [smem:[#allocation17_spill]] %s1967_s4 }
   0x6   :  { %1989 = sst [smem:[#allocation18_spill]] %s1978_s15 }
   0x7   :  { %20 = vsyncpa [#allocation5], 0 }
   0x8   :  { %21 = vsyncpa [#allocation6], 0 }
   0x9   :  { %23 = vsyncpa [#allocation6 + $0x1], 0  ;;  %s1716_s18 = smov 0   ;;  %s1718_s19 = smov 0  }
   0xa   :  { %s1720_s20 = smov 0   ;;  %s1722_s21 = smov 0  }
   0xb   :  { %s1724_s22 = smov 0   ;;  %s1726_s23 = smov 0  }
   0xc LB: > { %1990 = sst [smem:[#allocation10_spill]] %s1602_s18  ;;  %s1290_s24 = sadd.s32 4294967295, %s1622_s23   ;;  %s1622_s23 = sphi %s1726_s23, %s29_s23   ;;  %s1618_s22 = sphi %s1724_s22, %s2008_s22   ;;  %s1614_s21 = sphi %s1722_s21, %s2007_s21   ;;  %s1610_s20 = sphi %s1720_s20, %s2006_s20   ;;  %s1606_s19 = sphi %s1718_s19, %s2005_s19   ;;  %s1602_s18 = sphi %s1716_s18, %s2004_s18  }
   0xd   : > { %s1291_s25 = sadd.s32 4294967294, %s1622_s23   ;;  %s41_s26 = sadd.s32 1, %s1618_s22 }
   0xe   : > { %s370_s27 = sadd.s32 1, %s1610_s20  ;;  %p43_p0 = scmp.ge.s32.totalorder %s41_s26, 2 }
   0xf   : > { %p380_p1 = scmp.ne.s32.totalorder %s1610_s20, %s1606_s19  ;;  %p381_p2 = scmp.eq.s32.totalorder %s1290_s24, 1 }
  0x10   : > { %p386_p3 = scmp.ne.s32.totalorder %s1606_s19, %s1602_s18  ;;  %s2010_s26 = smov (%p43_p0, %s41_s26), 0 }
  0x11   : > { %1991 = sst [smem:[#allocation11_spill]] %s2010_s26  ;;  %p1756_p4 = por %p381_p2, %p380_p1 }
  0x12   : > { %p387_p5 = scmp.eq.s32.totalorder %s1291_s25, 1  ;;  %s365_s29 = ssub.s32 %s1618_s22, %s2010_s26 }
  0x13   : > { %s1992_s28 = scalar_select %p1756_p4, 1, 0 }
  0x14   : > { %p1292_p6 = scmp.ge.s32.totalorder %s1622_s23, 1  ;;  %p368_p7 = scmp.eq.s32.totalorder %s365_s29, 0 }
  0x15   : > { %1993 = sst [smem:[#allocation12_spill]] %s1992_s28  ;;  %p1763_p8 = por %p387_p5, %p386_p3 }
  0x16   : > { %p394_p9 = scmp.lt.s32.totalorder %s1622_s23, 3  ;;  %p1410_p11 = scmp.eq.s32.totalorder %s1290_s24, 0 }
  0x17   : > { %s1769_s16 = scalar_select %p368_p7, %s1610_s20, %s370_s27  }
  0x18   : > { %p395_p10 = pnand %p1292_p6, %p394_p9  ;;  %s1995_s1 = sld [smem:[#allocation14_spill]] }
  0x19   : > { %s1624_s28 = smov [#allocation4]  }
  0x1a   : > { %p1402_p12 = pneg %p395_p10  ;;  %s408_s25 = sshll.u32 %s1624_s28, 4  ;;  %s409_s25 = int_to_ptr.vmem [resolvable:$true] %s408_s25 }
  0x1b   : > { %467 = sbr.rel (%p395_p10) target bundleno = 1923 (0x783), region = 80 }
  0x1c   : > { %p1403_p13 = pnand %p1410_p11, %p1402_p12 }
  0x1e   : > { %s406_s15 = sshll.u32 %s1995_s1, 4  ;;  %s407_s15 = int_to_ptr.hbm [resolvable:$true] %s406_s15 }
  0x1f   : > { %1405 = dma.hbm_to_vmem [thread:$0]  (!%p1403_p13), %s407_s15, 16, %s409_s25, [#allocation5]  }
  0x20   : > { %1593 = dma.done.wait (%p1410_p11), [#allocation5], 16  }
  0x21   : > { %1595 = vsyncadd (%p1410_p11), [#allocation5], 4294967280  ;;  %p515_p0 = scmp.lt.s32.totalorder %s1614_s21, 1  ;;  %s1996_s0 = sld [smem:[#allocation13_spill]]  ;;  %vm527_vm0 = vcmask 261120   ;;  %v1625_v2 = vmov 32.0  }
  0x22   : > { %1484 = vrcp.f32 %v1625_v2  ;;  %v1381_v19 = vld [vmem:[%s1968_s5 + $0x8] sm:$0xff]  ;;  %v1380_v20 = vld [vmem:[%s1968_s5] sm:$0xff]  ;;  %s1997_s3 = sld [smem:[#allocation16_spill]]  ;;  %vm603_vm8 = vcmask 60416   ;;  %vm733_vm9 = vcmask 64512   ;;  %s1628_s24 = smov 112  }
  0x23   : > { %s516_s27 = scalar_select %p515_p0, %s1614_s21, 1  ;;  %595 = vmatpush.bf16.msra.mxu1 %v1381_v19  ;;  %v1473_v37 = vld [vmem:[#allocation4] ss:$0 sm:$0xff]  ;;  %vm865_vm10 = vcmask 1043456   ;;  %vm952_vm11 = vcmask 130048   ;;  %vm954_vm12 = vcmask 195584  }
  0x24   : > { %s1998_s2 = sld [smem:[#allocation15_spill]]  ;;  %v1475_v50 = vld [vmem:[#allocation4] ss:$0 sm:$0xff]  ;;  %s1629_s26 = smov 88  }
  0x25   : > { %s1298_s29 = sshll.u32 %s516_s27, 3  ;;  %v1477_v55 = vld [vmem:[%s1969_s6] ss:$0 sm:$0xff]  ;;  %s1626_s27 = smov 104  }
  0x26   : > { %s1999_s4 = sld [smem:[#allocation17_spill]]  ;;  %s1630_s28 = smov 80  }
  0x27   : > { %s518_s18 = scalar_lea.vmem %s1996_s0, %s1298_s29  ;;  %596 = vmatpush.bf16.msra.mxu1 %v1380_v20  ;;  %s1627_s29 = smov 120  }
  0x28   : > { %v1779_v0 = vld [vmem:[%s518_s18] sm:$0xff]  ;;  %v1485_v3 = vpop.eup %1484  ;;  %v1383_v21 = vld [vmem:[%s1997_s3 + $0x8] sm:$0xff]  ;;  %s1631_s17 = smov 96   ;;  %s1632_s25 = smov 72  }
  0x29   : > { %v528_v1 = vsel %vm527_vm0, %v1779_v0, 0.0  ;;  %v532_v4 = vmul.f32 32.0, %v1485_v3  ;;  %vm536_vm1 = vweird.f32 %v1485_v3  ;;  %v1382_v24 = vld [vmem:[%s1997_s3] sm:$0xff] }
  0x2a   : > { %529 = vadd.xlane.f32.xlu0 %v528_v1  ;;  %v1474_v41 = vld [vmem:[%s1998_s2] ss:$0 sm:$0xff] }
  0x2b   : > { %v533_v5 = vsub.f32 1.0, %v532_v4  ;;  %713 = vmatpush.bf16.msrb.mxu1 %v1383_v21  ;;  %v1476_v52 = vld [vmem:[%s1998_s2] ss:$0 sm:$0xff] }
  0x2c   : > { %v1478_v62 = vld [vmem:[%s1999_s4] ss:$0 sm:$0xff] }
  0x2d   : > { %v534_v6 = vmul.f32 %v1485_v3, %v533_v5 }
  0x2f   : > { %v535_v7 = vadd.f32 %v1485_v3, %v534_v6  ;;  %714 = vmatpush.bf16.msrb.mxu1 %v1382_v24 }
  0x31   : > { %v1783_v8 = vsel %vm536_vm1, %v1485_v3, %v535_v7 }
  0x32   : > { %647 = vadd.xlane.f32.xlu0 %v528_v1 }
  0x9d   : > { %v530_v9 = vpop.xlane.xlu0 %529 }
  0x9e   : > { %v538_v10 = vmul.f32 %v1783_v8, %v530_v9 }
  0xa0   : > { %v539_v11 = vsub.f32 %v1779_v0, %v538_v10 }
  0xa2   : > { %v540_v12 = vmul.f32 %v539_v11, %v539_v11 }
  0xa4   : > { %v541_v13 = vsel %vm527_vm0, %v540_v12, 0.0 }
  0xa5   : > { %542 = vadd.xlane.f32.xlu1 %v541_v13  ;;  %v648_v14 = vpop.xlane.xlu0 %647 }
  0xa6   : > { %v656_v15 = vmul.f32 %v648_v14, %v1783_v8 }
  0xa8   : > { %v657_v16 = vsub.f32 %v1779_v0, %v656_v15 }
  0xaa   : > { %v658_v17 = vmul.f32 %v657_v16, %v657_v16 }
  0xac   : > { %v659_v18 = vsel %vm527_vm0, %v658_v17, 0.0 }
  0xad   : > { %660 = vadd.xlane.f32.xlu1 %v659_v18 }
 0x118   : > { %v543_v22 = vpop.xlane.xlu1 %542 }
 0x119   : > { %v544_v23 = vmul.f32 %v543_v22, %v1783_v8 }
 0x11b   : > { %v545_v25 = vadd.f32 1e-05, %v544_v23 }
 0x11d   : > { %1486 = vrsqrt.f32 %v545_v25  ;;  %vm552_vm3 = vweird.f32 %v545_v25 }
 0x120   : > { %v661_v26 = vpop.xlane.xlu1 %660 }
 0x121   : > { %v662_v27 = vmul.f32 %v661_v26, %v1783_v8 }
 0x123   : > { %v1487_v28 = vpop.eup %1486  ;;  %v663_v29 = vadd.f32 1e-05, %v662_v27 }
 0x124   : > { %v547_v30 = vmul.f32 %v1487_v28, %v545_v25  ;;  %vm553_vm2 = vweird.f32 %v1487_v28 }
 0x125   : > { %1488 = vrsqrt.f32 %v663_v29  ;;  %vm554_vm4 = vmor %vm552_vm3, %vm553_vm2  ;;  %vm670_vm5 = vweird.f32 %v663_v29 }
 0x126   : > { %v548_v31 = vmul.f32 %v1487_v28, %v547_v30 }
 0x128   : > { %v549_v32 = vmul.f32 0.5, %v548_v31 }
 0x12a   : > { %v550_v33 = vsub.f32 1.5, %v549_v32 }
 0x12b   : > { %v1489_v34 = vpop.eup %1488 }
 0x12c   : > { %v551_v35 = vmul.f32 %v1487_v28, %v550_v33  ;;  %v665_v36 = vmul.f32 %v1489_v34, %v663_v29  ;;  %vm671_vm6 = vweird.f32 %v1489_v34 }
 0x12d   : > { %vm672_vm7 = vmor %vm670_vm5, %vm671_vm6 }
 0x12e   : > { %v555_v38 = vsel %vm554_vm4, %v1487_v28, %v551_v35  ;;  %v666_v39 = vmul.f32 %v1489_v34, %v665_v36 }
 0x12f   : > { %v556_v40 = vmul.f32 %v555_v38, %v539_v11 }
 0x130   : > { %v667_v42 = vmul.f32 0.5, %v666_v39 }
 0x131   : > { %v560_v43 = vmul.f32 %v1473_v37, %v556_v40 }
 0x132   : > { %v668_v44 = vsub.f32 1.5, %v667_v42 }
 0x133   : > { %v564_v45 = vadd.f32 %v1474_v41, %v560_v43 }
 0x134   : > { %v669_v46 = vmul.f32 %v1489_v34, %v668_v44 }
 0x135   : > { %v565_v47 = vpack.c.bf16 %v564_v45, %v564_v45 }
 0x136   : > { %v673_v48 = vsel %vm672_vm7, %v1489_v34, %v669_v46 }
 0x137   : > { %1307 = vmatmul.msk.bf16.vlgmr.msra.gmra.mxu1 %vm527_vm0, %v565_v47  ;;  %v674_v49 = vmul.f32 %v673_v48, %v657_v16 }
 0x139   : > { %v678_v51 = vmul.f32 %v1475_v50, %v674_v49 }
 0x13b   : > { %v682_v53 = vadd.f32 %v1476_v52, %v678_v51 }
 0x13d   : > { %v683_v54 = vpack.c.bf16 %v682_v53, %v682_v53 }
 0x147   : > { %1316 = vmatmul.msk.bf16.vlgmr.msrb.gmra.mxu1 %vm527_vm0, %v683_v54 }
 0x1b4   : > { %v598_v56 = vpop.f32.mrf.mxu1 }
 0x1b5   : > { %v599_v57 = vadd.f32 %v1477_v55, %v598_v56 }
 0x1b7   : > { %v1816_v58 = vpack.c.bf16 %v599_v57, %v599_v57 }
 0x1b9   : > { %630 = vrot.lane.b32.xlu0 %v1816_v58, %s1626_s27  ;;  %610 = vrot.lane.b32.xlu2 %v1816_v58, %s1627_s29  ;;  %604 = vst.msk [vmem:[#allocation2] sm:$0xf] %vm603_vm8, %v1816_v58 }
 0x1bc   : > { %v600_v59 = vpop.f32.mrf.mxu1 }
 0x1c0   : > { %v729_v60 = vld [vmem:[#allocation2] sm:$0xf] }
 0x1c1   : > { %620 = vrot.lane.b32.xlu2 %v1816_v58, %s1628_s24  ;;  %v738_v61 = vsel %vm733_vm9, %v729_v60, 0 }
 0x1c2   : > { %747 = vmatpush.bf16.xpose.msra.mxu2 %v738_v61 }
 0x1c4   : > { %v716_v63 = vpop.f32.mrf.mxu1 }
 0x1c5   : > { %v717_v1 = vadd.f32 %v1478_v62, %v716_v63 }
 0x1c7   : > { %v720_v2 = vmul.f32 0.35355338, %v717_v1 }
 0x1c9   : > { %v721_v3 = vpack.c.bf16 %v720_v2, %v720_v2 }
 0x1cb   : > { %725 = vrot.lane.b32.xlu2 %v721_v3, %s1628_s24  ;;  %723 = vrot.lane.b32.xlu1 %v721_v3, %s1627_s29  ;;  %s1634_s29 = smov 8   ;;  %s1635_s24 = smov 24  }
 0x1cc   : > { %1317 = vmatmul.msk.bf16.vlgmr.msra.gmra.mxu2 %vm733_vm9, %v721_v3  ;;  %v718_v4 = vpop.f32.mrf.mxu1 }
 0x1d3   : > { %727 = vrot.lane.b32.xlu2 %v721_v3, %s1626_s27  ;;  %s1633_s27 = smov 16  }
 0x213   : > { %v611_v5 = vpop.permute.xlu2 %610 }
 0x214   : > { %614 = vst.msk [vmem:[#allocation2 + $0x4] sm:$0xf] %vm603_vm8, %v611_v5 }
 0x21b   : > { %v621_v6 = vpop.permute.xlu2 %620  ;;  %v730_v7 = vld [vmem:[#allocation2 + $0x4] sm:$0xf] }
 0x21c   : > { %624 = vst.msk [vmem:[#allocation2 + $0x8] sm:$0xf] %vm603_vm8, %v621_v6  ;;  %v757_v9 = vsel %vm733_vm9, %v730_v7, 0 }
 0x21d   : > { %766 = vmatpush.bf16.xpose.msra.mxu3 %v757_v9 }
 0x223   : > { %v731_v10 = vld [vmem:[#allocation2 + $0x8] sm:$0xf] }
 0x224   : > { %v776_v11 = vsel %vm733_vm9, %v731_v10, 0 }
 0x225   : > { %785 = vmatpush.bf16.xpose.msra.mxu0 %v776_v11  ;;  %v726_v12 = vpop.permute.xlu2 %725 }
 0x22b   : > { %v631_v13 = vpop.permute.xlu0 %630 }
 0x22c   : > { %634 = vst.msk [vmem:[#allocation2 + $0xc] sm:$0xf] %vm603_vm8, %v631_v13  ;;  %1319 = vmatmul.msk.bf16.vlgmr.msra.gmra.mxu0 %vm733_vm9, %v726_v12 }
 0x22d   : > { %v728_v16 = vpop.permute.xlu2 %727 }
 0x233   : > { %v732_v14 = vld [vmem:[#allocation2 + $0xc] sm:$0xf] }
 0x234   : > { %v795_v15 = vsel %vm733_vm9, %v732_v14, 0 }
 0x235   : > { %804 = vmatpush.bf16.xpose.msra.mxu1 %v795_v15 }
 0x23c   : > { %1320 = vmatmul.msk.bf16.vlgmr.msra.gmra.mxu1 %vm733_vm9, %v728_v16 }
 0x23d   : > { %v724_v17 = vpop.permute.xlu1 %723 }
 0x23e   : > { %1318 = vmatmul.msk.bf16.vlgmr.msra.gmra.mxu3 %vm733_vm9, %v724_v17 }
 0x24f   : > { %v749_v18 = vpop.f32.mrf.mxu2 }
 0x250   : > { %v810_v29 = vsel %vm733_vm9, %v749_v18, -inf }
 0x257   : > { %v751_v19 = vpop.f32.mrf.mxu2 }
 0x2a9   : > { %v787_v20 = vpop.f32.mrf.mxu0 }
 0x2aa   : > { %v816_v21 = vsel %vm733_vm9, %v787_v20, -inf }
 0x2ab   : > { %817 = vmax.xlane.f32.xlu0 %v816_v21 }
 0x2b1   : > { %v789_v22 = vpop.f32.mrf.mxu0 }
 0x2b9   : > { %v806_v23 = vpop.f32.mrf.mxu1 }
 0x2ba   : > { %v819_v24 = vsel %vm733_vm9, %v806_v23, -inf }
 0x2bb   : > { %820 = vmax.xlane.f32.xlu1 %v819_v24  ;;  %v1385_v24 = vld [vmem:[%s1970_s7 + $0x8] sm:$0xff] }
 0x2bf   : > { %615 = vrot.lane.b32.xlu0 %v1816_v58, %s1629_s26 }
 0x2c1   : > { %v768_v25 = vpop.f32.mrf.mxu3  ;;  %v808_v26 = vpop.f32.mrf.mxu1 }
 0x2c2   : > { %v813_v27 = vsel %vm733_vm9, %v768_v25, -inf }
 0x2c3   : > { %814 = vmax.xlane.f32.xlu2 %v813_v27 }
 0x2c9   : > { %v770_v28 = vpop.f32.mrf.mxu3 }
 0x2cb   : > { %811 = vmax.xlane.f32.xlu2 %v810_v29 }
 0x2d4   : > { %625 = vrot.lane.b32.xlu1 %v1816_v58, %s1630_s28  ;;  %s2000_s28 = sld [smem:[#allocation18_spill]] }
 0x2dc   : > { %606 = vrot.lane.b32.xlu1 %v1816_v58, %s1631_s17 }
 0x31e   : > { %v818_v30 = vpop.xlane.xlu0 %817 }
 0x31f   : > { %v824_v31 = vsub.f32 %v787_v20, %v818_v30 }
 0x321   : > { %v830_v32 = vmul.f32 1.442695, %v824_v31 }
 0x323   : > { %1490 = vpow2.f32 %v830_v32 }
 0x329   : > { %v1491_v33 = vpop.eup %1490 }
 0x32a   : > { %v840_v34 = vsel %vm733_vm9, %v1491_v33, 0.0 }
 0x32b   : > { %841 = vadd.xlane.f32.xlu2 %v840_v34 }
 0x32e   : > { %v821_v35 = vpop.xlane.xlu1 %820 }
 0x32f   : > { %v825_v36 = vsub.f32 %v806_v23, %v821_v35 }
 0x331   : > { %v832_v37 = vmul.f32 1.442695, %v825_v36  ;;  %v616_v38 = vpop.permute.xlu0 %615 }
 0x332   : > { %619 = vst.msk [vmem:[#allocation3 + $0x4] sm:$0xf] %vm603_vm8, %v616_v38 }
 0x333   : > { %1492 = vpow2.f32 %v832_v37 }
 0x336   : > { %v815_v39 = vpop.xlane.xlu2 %814 }
 0x337   : > { %v823_v40 = vsub.f32 %v768_v25, %v815_v39  ;;  %v1384_v25 = vld [vmem:[%s1970_s7] sm:$0xff] }
 0x339   : > { %v1493_v41 = vpop.eup %1492  ;;  %v828_v42 = vmul.f32 1.442695, %v823_v40  ;;  %v859_v43 = vld [vmem:[#allocation3 + $0x4] sm:$0xf] }
 0x33a   : > { %v843_v44 = vsel %vm733_vm9, %v1493_v41, 0.0  ;;  %v886_v45 = vsel %vm865_vm10, %v859_v43, 0 }
 0x33b   : > { %1494 = vpow2.f32 %v828_v42  ;;  %844 = vadd.xlane.f32.xlu0 %v843_v44  ;;  %895 = vmatpush.bf16.msrb.mxu3 %v886_v45  ;;  %v1387_v44 = vld [vmem:[%s1974_s11 + $0x8] sm:$0xff] }
 0x33e   : > { %v812_v46 = vpop.xlane.xlu2 %811 }
 0x33f   : > { %v822_v47 = vsub.f32 %v749_v18, %v812_v46  ;;  %1056 = vmatpush.bf16.msra.mxu3 %v1387_v44 }
 0x341   : > { %v1495_v48 = vpop.eup %1494  ;;  %v826_v49 = vmul.f32 1.442695, %v822_v47 }
 0x342   : > { %v837_v50 = vsel %vm733_vm9, %v1495_v48, 0.0 }
 0x343   : > { %1496 = vpow2.f32 %v826_v49  ;;  %838 = vadd.xlane.f32.xlu2 %v837_v50 }
 0x346   : > { %v626_v51 = vpop.permute.xlu1 %625 }
 0x347   : > { %629 = vst.msk [vmem:[#allocation3 + $0x8] sm:$0xf] %vm603_vm8, %v626_v51 }
 0x349   : > { %v1497_v52 = vpop.eup %1496 }
 0x34a   : > { %v834_v53 = vsel %vm733_vm9, %v1497_v52, 0.0 }
 0x34b   : > { %835 = vadd.xlane.f32.xlu1 %v834_v53 }
 0x34e   : > { %v607_v54 = vpop.permute.xlu1 %606  ;;  %v860_v55 = vld [vmem:[#allocation3 + $0x8] sm:$0xf] }
 0x34f   : > { %609 = vst.msk [vmem:[#allocation3] sm:$0xf] %vm603_vm8, %v607_v54  ;;  %v905_v56 = vsel %vm865_vm10, %v860_v55, 0  ;;  %v1480_v54 = vld [vmem:[%s1972_s9] ss:$0 sm:$0xff] }
 0x350   : > { %914 = vmatpush.bf16.msrb.mxu0 %v905_v56 }
 0x356   : > { %v858_v57 = vld [vmem:[#allocation3] sm:$0xf] }
 0x357   : > { %v867_v59 = vsel %vm865_vm10, %v858_v57, 0 }
 0x358   : > { %876 = vmatpush.bf16.msrb.mxu2 %v867_v59 }
 0x35b   : > { %635 = vrot.lane.b32.xlu2 %v1816_v58, %s1632_s25  ;;  %s512_s25 = sand.u32 1, %s1606_s19  }
 0x35c   : > { %986 = vmatpush.bf16.msra.mxu2 %v1385_v24 }
 0x360   : > { %987 = vmatpush.bf16.msra.mxu2 %v1384_v25 }
 0x39e   : > { %v842_v60 = vpop.xlane.xlu2 %841 }
 0x39f   : > { %1498 = vrcp.f32 %v842_v60 }
 0x3a5   : > { %v1499_v61 = vpop.eup %1498 }
 0x3a6   : > { %v852_v62 = vmul.f32 %v1499_v61, %v1491_v33  ;;  %v1479_v33 = vld [vmem:[%s1971_s8] ss:$0 sm:$0xff]  ;;  %v1395_v61 = vld [vmem:[%s1976_s13 + $0x38] sm:$0xff] }
 0x3a7   : > { %1176 = vmatpush.bf16.msra.mxu0 %v1395_v61 }
 0x3a8   : > { %v856_v63 = vpack.c.bf16 %v852_v62, %v852_v62  ;;  %v1394_v62 = vld [vmem:[%s1976_s13 + $0x30] sm:$0xff] }
 0x3aa   : > { %1323 = vmatmul.msk.bf16.vlgmr.msrb.gmra.mxu0 %vm733_vm9, %v856_v63  ;;  %v1482_v63 = vld [vmem:[%s1975_s12] ss:$0 sm:$0xff] }
 0x3ab   : > { %1177 = vmatpush.bf16.msra.mxu0 %v1394_v62 }
 0x3ae   : > { %v845_v2 = vpop.xlane.xlu0 %844 }
 0x3b6   : > { %v839_v1 = vpop.xlane.xlu2 %838 }
 0x3b7   : > { %1500 = vrcp.f32 %v839_v1 }
 0x3b8   : > { %1502 = vrcp.f32 %v845_v2  ;;  %v1393_v2 = vld [vmem:[%s1976_s13 + $0x28] sm:$0xff] }
 0x3b9   : > { %1178 = vmatpush.bf16.msra.mxu0 %v1393_v2 }
 0x3bd   : > { %v1501_v3 = vpop.eup %1500 }
 0x3be   : > { %v851_v4 = vmul.f32 %v1501_v3, %v1495_v48  ;;  %v836_v5 = vpop.xlane.xlu1 %835  ;;  %v636_v6 = vpop.permute.xlu2 %635 }
 0x3bf   : > { %1504 = vrcp.f32 %v836_v5  ;;  %639 = vst.msk [vmem:[#allocation3 + $0xc] sm:$0xf] %vm603_vm8, %v636_v6  ;;  %v1503_v58 = vpop.eup %1502  ;;  %v1392_v5 = vld [vmem:[%s1976_s13 + $0x20] sm:$0xff] }
 0x3c0   : > { %v855_v7 = vpack.c.bf16 %v851_v4, %v851_v4  ;;  %v853_v10 = vmul.f32 %v1503_v58, %v1493_v41  ;;  %1179 = vmatpush.bf16.msra.mxu0 %v1392_v5 }
 0x3c2   : > { %1322 = vmatmul.msk.bf16.vlgmr.msrb.gmra.mxu3 %vm733_vm9, %v855_v7  ;;  %v857_v15 = vpack.c.bf16 %v853_v10, %v853_v10 }
 0x3c5   : > { %v1505_v9 = vpop.eup %1504 }
 0x3c6   : > { %v850_v11 = vmul.f32 %v1505_v9, %v1497_v52  ;;  %v861_v12 = vld [vmem:[#allocation3 + $0xc] sm:$0xf] }
 0x3c7   : > { %v924_v13 = vsel %vm865_vm10, %v861_v12, 0  ;;  %v1391_v9 = vld [vmem:[%s1976_s13 + $0x18] sm:$0xff] }
 0x3c8   : > { %v854_v14 = vpack.c.bf16 %v850_v11, %v850_v11  ;;  %933 = vmatpush.bf16.msrb.mxu1 %v924_v13  ;;  %1180 = vmatpush.bf16.msra.mxu0 %v1391_v9 }
 0x3ca   : > { %1321 = vmatmul.msk.bf16.vlgmr.msrb.gmra.mxu2 %vm733_vm9, %v854_v14  ;;  %v1390_v14 = vld [vmem:[%s1976_s13 + $0x10] sm:$0xff] }
 0x3cb   : > { %1324 = vmatmul.msk.bf16.vlgmr.msrb.gmra.mxu1 %vm733_vm9, %v857_v15 }
 0x3cc   : > { %1181 = vmatpush.bf16.msra.mxu0 %v1390_v14 }
 0x427   : > { %v916_v16 = vpop.f32.mrf.mxu0 }
 0x428   : > { %944 = vrot.lane.b32.xlu2 %v916_v16, %s1633_s27  ;;  %s1297_s27 = sshll.u32 %s512_s25, 3 }
 0x429   : > { %s514_s1 = scalar_lea.vmem [#allocation7], %s1297_s27  ;;  %s1560_s27 = scalar_lea.hbm %s2000_s28, 16 }
 0x42a   : > { %s1205_s2 = sshll.u32 %s514_s1, 4  ;;  %s1206_s2 = int_to_ptr.vmem [resolvable:$true] %s1205_s2 }
 0x42f   : > { %v918_v17 = vpop.f32.mrf.mxu0 }
 0x445   : > { %v897_v18 = vpop.f32.mrf.mxu3 }
 0x446   : > { %940 = vrot.lane.b32.xlu2 %v897_v18, %s1634_s29  ;;  %s1377_s29 = sshll.u32 %s1614_s21, 3  ;;  %s1192_s21 = scalar_lea.sflag [#allocation6], %s512_s25 }
 0x447   : > { %s1203_s0 = scalar_lea.hbm %s2000_s28, %s1377_s29 }
 0x448   : > { %v935_v19 = vpop.f32.mrf.mxu1  ;;  %s1207_s3 = sshll.u32 %s1203_s0, 4  ;;  %s1208_s3 = int_to_ptr.hbm [resolvable:$true] %s1207_s3 }
 0x449   : > { %s1554_s4 = sshra.s32 %s1208_s3, 4  ;;  %s1555_s4 = int_to_ptr.hbm [resolvable:$true] %s1554_s4 }
 0x44a   : > { %p1561_p5 = scmp.lt.s32.totalorder %s1555_s4, %s2000_s28 }
 0x44d   : > { %v878_v20 = vpop.f32.mrf.mxu2  ;;  %v899_v21 = vpop.f32.mrf.mxu3 }
 0x44e   : > { %948 = vrot.lane.b32.xlu2 %v935_v19, %s1635_s24  ;;  %v1389_v19 = vld [vmem:[%s1976_s13 + $0x8] sm:$0xff]  ;;  %s1556_s24 = scalar_lea.hbm %s1555_s4, 8 }
 0x44f   : > { %1182 = vmatpush.bf16.msra.mxu0 %v1389_v19  ;;  %p1557_p1 = scmp.ne.s32.totalorder %s1555_s4, %s1556_s24  ;;  %p1562_p6 = scmp.lt.s32.totalorder %s1560_s27, %s1556_s24 }
 0x450   : > { %v937_v22 = vpop.f32.mrf.mxu1 }
 0x451   : > { %p1558_p2 = pnand %p1557_p1, %p1756_p4  ;;  %p1563_p7 = por %p1562_p6, %p1561_p5 }
 0x453   : > { %p1559_p3 = pneg %p1558_p2 }
 0x455   : > { %v880_v23 = vpop.f32.mrf.mxu2  ;;  %p1564_p9 = pnand %p1563_p7, %p1559_p3 }
 0x456   : > { %v1388_v23 = vld [vmem:[%s1976_s13] sm:$0xff] }
 0x457   : > { %1183 = vmatpush.bf16.msra.mxu0 %v1388_v23 }
 0x482   : > { %v945_v26 = vpop.permute.xlu2 %944 }
 0x4a0   : > { %v941_v27 = vpop.permute.xlu2 %940 }
 0x4a1   : > { %v951_v28 = vsel %vm733_vm9, %v878_v20, %v941_v27 }
 0x4a2   : > { %v953_v29 = vsel %vm952_vm11, %v951_v28, %v945_v26 }
 0x4a8   : > { %v949_v30 = vpop.permute.xlu2 %948 }
 0x4a9   : > { %v955_v31 = vsel %vm954_vm12, %v953_v29, %v949_v30 }
 0x4aa   : > { %v956_v32 = vpack.c.bf16 %v955_v31, %v955_v31 }
 0x4ac   : > { %1333 = vmatmul.msk.bf16.vlgmr.msra.gmra.mxu2 %vm527_vm0, %v956_v32 }
 0x52f   : > { %v989_v34 = vpop.f32.mrf.mxu2 }
 0x530   : > { %v990_v35 = vadd.f32 %v1479_v33, %v989_v34 }
 0x532   : > { %v1873_v36 = vadd.f32 %v990_v35, %v1779_v0  ;;  %v1386_v0 = vld [vmem:[%s1974_s11] sm:$0xff] }
 0x533   : > { %1057 = vmatpush.bf16.msra.mxu3 %v1386_v0 }
 0x534   : > { %v996_v37 = vsel %vm527_vm0, %v1873_v36, 0.0 }
 0x535   : > { %997 = vadd.xlane.f32.xlu0 %v996_v37 }
 0x537   : > { %v991_v38 = vpop.f32.mrf.mxu2 }
 0x5a8   : > { %v998_v39 = vpop.xlane.xlu0 %997 }
 0x5a9   : > { %v999_v40 = vmul.f32 %v998_v39, %v1783_v8 }
 0x5ab   : > { %v1000_v41 = vsub.f32 %v1873_v36, %v999_v40 }
 0x5ad   : > { %v1001_v42 = vmul.f32 %v1000_v41, %v1000_v41 }
 0x5af   : > { %v1002_v43 = vsel %vm527_vm0, %v1001_v42, 0.0 }
 0x5b0   : > { %1003 = vadd.xlane.f32.xlu2 %v1002_v43 }
 0x623   : > { %v1004_v45 = vpop.xlane.xlu2 %1003 }
 0x624   : > { %v1005_v46 = vmul.f32 %v1004_v45, %v1783_v8  ;;  %v1481_v8 = vld [vmem:[%s1973_s10] ss:$0 sm:$0xff] }
 0x626   : > { %v1006_v47 = vadd.f32 1e-05, %v1005_v46 }
 0x628   : > { %1506 = vrsqrt.f32 %v1006_v47  ;;  %vm1013_vm14 = vweird.f32 %v1006_v47 }
 0x62e   : > { %v1507_v48 = vpop.eup %1506 }
 0x62f   : > { %v1008_v49 = vmul.f32 %v1507_v48, %v1006_v47  ;;  %vm1014_vm13 = vweird.f32 %v1507_v48 }
 0x630   : > { %vm1015_vm15 = vmor %vm1013_vm14, %vm1014_vm13 }
 0x631   : > { %v1009_v50 = vmul.f32 %v1507_v48, %v1008_v49 }
 0x633   : > { %v1010_v51 = vmul.f32 0.5, %v1009_v50  ;;  %v1483_v50 = vld [vmem:[%s1977_s14] ss:$0 sm:$0xff] }
 0x635   : > { %v1011_v52 = vsub.f32 1.5, %v1010_v51 }
 0x637   : > { %v1012_v53 = vmul.f32 %v1507_v48, %v1011_v52 }
 0x639   : > { %v1016_v55 = vsel %vm1015_vm15, %v1507_v48, %v1012_v53 }
 0x63a   : > { %v1017_v56 = vmul.f32 %v1016_v55, %v1000_v41 }
 0x63c   : > { %v1021_v57 = vmul.f32 %v1480_v54, %v1017_v56 }
 0x63e   : > { %v1025_v59 = vadd.f32 %v1481_v8, %v1021_v57 }
 0x640   : > { %v1026_v60 = vpack.c.bf16 %v1025_v59, %v1025_v59 }
 0x642   : > { %1342 = vmatmul.msk.bf16.vlgmr.msra.gmra.mxu3 %vm527_vm0, %v1026_v60 }
 0x6c5   : > { %v1059_v1 = vpop.f32.mrf.mxu3 }
 0x6c6   : > { %v1060_v3 = vadd.f32 %v1482_v63, %v1059_v1 }
 0x6c8   : > { %v1064_v4 = vmul.f32 0.70710677, %v1060_v3  ;;  %v1063_v46 = vmul.f32 0.5, %v1060_v3 }
 0x6ca   : > { %v1065_v6 = vmul.f32 %v1064_v4, %v1064_v4 }
 0x6cc   : > { %v1066_v7 = vmin.f32 %v1065_v6, 16.0 }
 0x6cd   : > { %v1061_v58 = vpop.f32.mrf.mxu3 }
 0x6ce   : > { %v1067_v10 = vmul.f32 2.1237322e-06, %v1066_v7  ;;  %v1078_v11 = vmul.f32 3.8918573e-05, %v1066_v7 }
 0x6d0   : > { %v1068_v12 = vadd.f32 0.00028619796, %v1067_v10  ;;  %v1079_v13 = vadd.f32 0.001143296, %v1078_v11 }
 0x6d2   : > { %v1069_v15 = vmul.f32 %v1068_v12, %v1066_v7  ;;  %v1080_v16 = vmul.f32 %v1079_v13, %v1066_v7 }
 0x6d4   : > { %v1081_v17 = vadd.f32 0.014752088, %v1080_v16  ;;  %v1070_v18 = vadd.f32 0.0036580483, %v1069_v15 }
 0x6d6   : > { %v1082_v20 = vmul.f32 %v1081_v17, %v1066_v7  ;;  %v1071_v22 = vmul.f32 %v1070_v18, %v1066_v7 }
 0x6d8   : > { %v1083_v21 = vadd.f32 0.112945676, %v1082_v20  ;;  %v1072_v26 = vadd.f32 0.05243302, %v1071_v22 }
 0x6da   : > { %v1084_v24 = vmul.f32 %v1083_v21, %v1066_v7  ;;  %v1073_v29 = vmul.f32 %v1072_v26, %v1066_v7 }
 0x6dc   : > { %v1085_v25 = vadd.f32 0.4994258, %v1084_v24  ;;  %v1074_v30 = vadd.f32 0.18741608, %v1073_v29 }
 0x6de   : > { %v1086_v27 = vmul.f32 %v1085_v25, %v1066_v7  ;;  %v1075_v32 = vmul.f32 %v1074_v30, %v1066_v7 }
 0x6e0   : > { %v1087_v28 = vadd.f32 1.0, %v1086_v27  ;;  %v1076_v37 = vadd.f32 1.1283791, %v1075_v32 }
 0x6e2   : > { %1508 = vrcp.f32 %v1087_v28  ;;  %v1099_v35 = vand.u32 2147483648, %v1087_v28  ;;  %v1097_v39 = vand.u32 2147483647, %v1087_v28  ;;  %vm1093_vm2 = vweird.f32 %v1087_v28 }
 0x6e3   : > { %v1077_v42 = vmul.f32 %v1076_v37, %v1064_v4 }
 0x6e4   : > { %v1100_v41 = vor.u32 1.1754944e-38, %v1099_v35  ;;  %vm1098_vm4 = vcmp.eq.f32.partialorder %v1097_v39, 8.507059e+37 }
 0x6e8   : > { %v1509_v31 = vpop.eup %1508 }
 0x6e9   : > { %v1089_v33 = vmul.f32 %v1509_v31, %v1087_v28  ;;  %vm1094_vm1 = vweird.f32 %v1509_v31 }
 0x6ea   : > { %vm1095_vm3 = vmor %vm1093_vm2, %vm1094_vm1 }
 0x6eb   : > { %v1090_v34 = vsub.f32 1.0, %v1089_v33 }
 0x6ed   : > { %v1091_v38 = vmul.f32 %v1509_v31, %v1090_v34 }
 0x6ef   : > { %v1092_v40 = vadd.f32 %v1509_v31, %v1091_v38 }
 0x6f1   : > { %v1096_v43 = vsel %vm1095_vm3, %v1509_v31, %v1092_v40 }
 0x6f2   : > { %v1101_v44 = vsel %vm1098_vm4, %v1100_v41, %v1096_v43 }
 0x6f3   : > { %v1102_v0 = vmul.f32 %v1101_v44, %v1077_v42 }
 0x6f5   : > { %v1343_v45 = vclamps-f32 %v1102_v0, 1.0 }
 0x6f7   : > { %v1105_v47 = vadd.f32 1.0, %v1343_v45 }
 0x6f9   : > { %v1106_v48 = vmul.f32 %v1105_v47, %v1063_v46 }
 0x6fb   : > { %v1107_v49 = vpack.c.bf16 %v1106_v48, %v1106_v48 }
 0x6fd   : > { %1184 = vmatmul.bf16.vlgmr.msra.gmra.mxu0 %v1107_v49 }
 0x77a   : > { %v1185_v51 = vpop.f32.mrf.mxu0 }
 0x77b   : > { %v1186_v52 = vadd.f32 %v1483_v50, %v1185_v51 }
 0x77d   : > { %v1189_v53 = vadd.f32 %v1186_v52, %v1873_v36 }
 0x77f   : > { %1190 = vst.msk [vmem:[%s514_s1] sm:$0xff] %vm527_vm0, %v1189_v53 }
 0x780   : > { %1567 = shalt.err (!%p1564_p9)
}
 0x781   : > { %1400 = dma.vmem_to_hbm [thread:$0]  (%p1756_p4), %s1206_s2, 128, %s1208_s3, %s1192_s21  }
 0x782   : > { %v1187_v36 = vpop.f32.mrf.mxu0 }
 0x783 PF: > { %s2002_s1 = sld [smem:[#allocation10_spill]]  ;;  %p1412_p10 = scmp.ge.s32.totalorder %s1622_s23, 2 }
 0x785   : > { %p1407_p11 = pnand %p1412_p10, %p1763_p8 }
 0x787   : > { %p1408_p12 = pneg %p1407_p11 }
 0x789   : > { %s1219_s25 = sand.u32 1, %s2002_s1  }
 0x78a   : > { %s1220_s26 = scalar_lea.sflag [#allocation6], %s1219_s25 }
 0x78b   : > { %1597 = dma.done.wait (%p1408_p12), %s1220_s26, 128  }
 0x78c   : > { %1599 = vsyncadd (%p1408_p12), %s1220_s26, 4294967168  ;;  %s29_s23 = sadd.s32 1, %s1622_s23   ;;  %s2003_s2 = sld [smem:[#allocation11_spill]] }
 0x78d   : > { %p26_p13 = scmp.ge.s32.totalorder %s29_s23, 4   ;;  %s2004_s18 = smov %s1606_s19 }
 0x78e   : > { %s2005_s19 = smov %s1610_s20  ;;  %s2006_s20 = smov %s1769_s16 }
 0x78f   : > { %s2007_s21 = smov %s1618_s22  ;;  %28 = sbr.rel (!%p26_p13) target bundleno = 12 (0xc), region = 131 }
 0x792   : > { %s2008_s22 = smov %s2003_s2 }
 0x794   :  { %1226 = vsyncpa [#allocation5], 1 }
 0x795   :  { %1228 = vsyncpa [#allocation5 + $0x1], 1 }
 0x796   :  { %1229 = vsyncpa [#allocation6], 1 }
 0x797   :  { %1231 = vsyncpa [#allocation6 + $0x1], 1 }

</bundles_post_ra>
